<compile_context>
chip_gen: v7x
topology: tpu7x:2x2x1
jax: 0.10.0
libtpu: 0.0.40
codegen_flags: <defaults>
</compile_context>

<pallas_src>
import functools

import numpy as np
import jax
import jax.numpy as jnp
from jax import lax
from jax.experimental import pallas as pl
from jax.experimental.pallas import tpu as pltpu

NEG_SLOPE = 0.1


def _has_bf16_vpu():
    """True on TPU generations with a bf16 VPU path (v6e / v7x and newer)."""
    try:
        kind = jax.devices()[0].device_kind.lower()
    except Exception:
        return False
    if "tpu" not in kind:
        return False
    return not any(old in kind for old in ("v2", "v3", "v4", "v5"))


def _classifier_kernel(p_ref, w0_ref, wstk_ref, bstk_ref, bf_ref, out_ref, *,
                       imgs_per_tile, rows_per_img, epi_dtype):
    # p: (TILE_M, 48) bf16 patch rows; `rows_per_img` consecutive rows / image.
    p = p_ref[...]
    bstk = bstk_ref[...]                                   # (4, 128) epi_dtype

    def layer(x_bf16, w_bf16, b_row):
        # MXU matmul with f32 accumulation; bias + LeakyReLU(0.1) in epi_dtype
        # (bf16 on v6e/v7x where the VPU has a bf16 path, f32 on v5e).
        acc = jnp.dot(x_bf16, w_bf16, preferred_element_type=jnp.float32)
        h = acc.astype(epi_dtype) + b_row
        return jnp.maximum(h, NEG_SLOPE * h)               # 1 vmul + 1 vmax

    # Conv2d(3,128,4,4) as patch matmul, then three Conv2d(128,128,1).
    h = layer(p, w0_ref[...], bstk[0:1, :])
    h = layer(h.astype(jnp.bfloat16), wstk_ref[0], bstk[1:2, :])
    h = layer(h.astype(jnp.bfloat16), wstk_ref[1], bstk[2:3, :])
    h = layer(h.astype(jnp.bfloat16), wstk_ref[2], bstk[3:4, :])

    # AvgPool2d(8): per-image sum over the 64 patch rows (f32 accumulation);
    # the 1/64 scale is folded into wf.
    pooled = jnp.sum(
        h.reshape(imgs_per_tile, rows_per_img, 128).astype(jnp.float32), axis=1)

    # Fused Conv2d(128,32,1) -> avgpool -> Linear(32,3):
    #   wf = (w4 @ wl^T)/64 padded to 128 lanes, bf = b4 @ wl^T + bl.
    # Lane-dense (imgs, 128) f32 store.
    out_ref[...] = (jnp.dot(pooled.astype(jnp.bfloat16), wstk_ref[3],
                            preferred_element_type=jnp.float32) + bf_ref[...])


def make_params(key):
    """Deterministic synthetic parameters (PyTorch layouts kept for reference)."""
    ks = jax.random.split(key, 12)
    p = {}
    # CondNet conv0: (out=128, in=3, kh=4, kw=4); arch_util scales by 0.1
    p["w0_oihw"] = jax.random.normal(ks[0], (128, 3, 4, 4), jnp.float32) * 0.05
    p["b0"] = jax.random.normal(ks[1], (128,), jnp.float32) * 0.01
    # three 1x1 convs 128->128
    p["w1_oihw"] = jax.random.normal(ks[2], (128, 128, 1, 1), jnp.float32) * 0.02
    p["b1"] = jax.random.normal(ks[3], (128,), jnp.float32) * 0.01
    p["w2_oihw"] = jax.random.normal(ks[4], (128, 128, 1, 1), jnp.float32) * 0.02
    p["b2"] = jax.random.normal(ks[5], (128,), jnp.float32) * 0.01
    p["w3_oihw"] = jax.random.normal(ks[6], (128, 128, 1, 1), jnp.float32) * 0.02
    p["b3"] = jax.random.normal(ks[7], (128,), jnp.float32) * 0.01
    # 1x1 conv 128->32
    p["w4_oihw"] = jax.random.normal(ks[8], (32, 128, 1, 1), jnp.float32) * 0.02
    p["b4"] = jax.random.normal(ks[9], (32,), jnp.float32) * 0.01
    # Linear(32, 3): weight (out=3, in=32), bias (3,)
    p["wl"] = jax.random.normal(ks[10], (3, 32), jnp.float32) * 0.1
    p["bl"] = jax.random.normal(ks[11], (3,), jnp.float32) * 0.01
    return p


def classifier_forward(x, p, imgs_per_tile=64):
    """Pallas implementation of Classifier.forward. x: (N, 3, 32, 32)."""
    N, C, H, W = x.shape
    assert C == 3 and H % 4 == 0 and W % 4 == 0
    OH, OW = H // 4, W // 4
    # The model's view(-1, 32) after AvgPool2d(8) assumes the conv output is 8x8.
    assert OH == 8 and OW == 8, "Classifier expects 32x32 sub-images"
    rows_per_img = OH * OW  # 64

    epi_dtype = jnp.bfloat16 if _has_bf16_vpu() else jnp.float32

    # --- tile sizing -------------------------------------------------------
    # Images per tile must be a multiple of 8 (f32 output block (ipt,128)).
    # Default 64 (tile_m = 4096) amortises per-step pipeline overhead; callers
    # may pass 128 for very large batches.  When the batch allows, cap the tile
    # so the grid has >= 2 steps (v7x can shard the parallel axis over 2 TCs).
    n8 = ((N + 7) // 8) * 8
    ipt = max(8, (int(imgs_per_tile) // 8) * 8)
    ipt = min(ipt, n8)
    if n8 >= 16:
        ipt = min(ipt, max(8, ((n8 // 2) // 8) * 8))
    n_pad = pl.cdiv(N, ipt) * ipt
    tile_m = ipt * rows_per_img
    m_pad = n_pad * rows_per_img

    # --- glue: pad batch + patchify for the stride-4 conv (bf16) ------------
    # allow_input_fusion on this operand lets XLA fuse the reshape/transpose/
    # cast into the pallas_call input DMA (no extra HBM round trip).
    x_pad = jnp.pad(x, ((0, n_pad - N), (0, 0), (0, 0), (0, 0)))
    patches = (x_pad.reshape(n_pad, C, OH, 4, OW, 4)
               .transpose(0, 2, 4, 1, 3, 5)
               .reshape(m_pad, C * 16)).astype(jnp.bfloat16)

    # --- glue: weights in matmul form (bf16 MXU operands) -------------------
    w0 = p["w0_oihw"].reshape(128, 48).T.astype(jnp.bfloat16)    # (48, 128)
    w1 = p["w1_oihw"].reshape(128, 128).T                        # (128, 128)
    w2 = p["w2_oihw"].reshape(128, 128).T
    w3 = p["w3_oihw"].reshape(128, 128).T
    # Fuse conv4 -> avgpool -> linear (all linear, no activation between):
    #   mean(h3 @ w4 + b4) @ wl^T + bl == sum(h3) @ (w4 @ wl^T / 64) + (b4 @ wl^T + bl)
    w4 = p["w4_oihw"].reshape(32, 128).T                         # (128, 32) f32
    wlT = p["wl"].T                                              # (32, 3)   f32
    wf = jnp.zeros((128, 128), jnp.float32).at[:, :3].set((w4 @ wlT) / 64.0)
    wstk = jnp.stack([w1, w2, w3, wf]).astype(jnp.bfloat16)      # (4, 128, 128)
    bstk = jnp.stack([p["b0"], p["b1"], p["b2"], p["b3"]]).astype(epi_dtype)
    bf = jnp.zeros((1, 128), jnp.float32).at[0, :3].set(p["b4"] @ wlT + p["bl"])

    kernel = functools.partial(_classifier_kernel,
                               imgs_per_tile=ipt,
                               rows_per_img=rows_per_img,
                               epi_dtype=epi_dtype)

    def _const2(i):
        return (0, 0)

    def _const3(i):
        return (0, 0, 0)

    flops = 2 * m_pad * (48 * 128 + 3 * 128 * 128) + 2 * n_pad * 128 * 128
    bytes_accessed = (patches.size * 2 + w0.size * 2 + wstk.size * 2
                      + bstk.size * bstk.dtype.itemsize + bf.size * 4
                      + n_pad * 128 * 4)

    out_pad = pl.pallas_call(
        kernel,
        out_shape=jax.ShapeDtypeStruct((n_pad, 128), jnp.float32),
        grid=(n_pad // ipt,),
        in_specs=[
            pl.BlockSpec((tile_m, 48), lambda i: (i, 0)),   # patches (pipelined)
            # weights/biases: constant index_maps -> VMEM resident, tiny footprint
            pl.BlockSpec((48, 128), _const2),               # w0
            pl.BlockSpec((4, 128, 128), _const3),           # w1, w2, w3, wf
            pl.BlockSpec((4, 128), _const2),                # b0..b3
            pl.BlockSpec((1, 128), _const2),                # fused final bias
        ],
        out_specs=pl.BlockSpec((ipt, 128), lambda i: (i, 0)),
        compiler_params=pltpu.CompilerParams(
            dimension_semantics=("parallel",),
            vmem_limit_bytes=48 * 1024 * 1024,
            allow_input_fusion=[True, False, False, False, False]),
        cost_estimate=pl.CostEstimate(flops=flops, transcendentals=0,
                                      bytes_accessed=int(bytes_accessed)),
    )(patches, w0, wstk, bstk, bf)

    # drop batch padding and lane padding
    return out_pad[:N, :3]


def classifier_reference(x, p):
    """Pure-JAX f32 reference (lax conv / reduce_window) for validation."""
    dn = ("NCHW", "OIHW", "NCHW")

    def leaky_ref(h):
        return jnp.where(h > 0, h, NEG_SLOPE * h)

    def conv(h, w, b, stride):
        h = lax.conv_general_dilated(h, w, (stride, stride), "VALID",
                                     dimension_numbers=dn)
        return h + b.reshape(1, -1, 1, 1)

    h = leaky_ref(conv(x, p["w0_oihw"], p["b0"], 4))
    h = leaky_ref(conv(h, p["w1_oihw"], p["b1"], 1))
    h = leaky_ref(conv(h, p["w2_oihw"], p["b2"], 1))
    h = leaky_ref(conv(h, p["w3_oihw"], p["b3"], 1))
    h = conv(h, p["w4_oihw"], p["b4"], 1)
    h = lax.reduce_window(h, 0.0, lax.add, (1, 1, 8, 8), (1, 1, 8, 8), "VALID") / 64.0
    h = h.reshape(-1, 32)                     # (N, 32, 1, 1) -> (N, 32)
    return h @ p["wl"].T + p["bl"][None, :]


if __name__ == "__main__":
    key = jax.random.PRNGKey(0)
    kx, kp = jax.random.split(key)
    # batch=2, channels=3, spatial=32 (required so AvgPool2d(8) -> 1x1 -> view(-1,32))
    x = jax.random.normal(kx, (2, 3, 32, 32), jnp.float32)
    params = make_params(kp)

    out = jax.jit(classifier_forward)(x, params)
    out = jax.block_until_ready(out)

    ref = classifier_reference(x, params)
    assert out.shape == (2, 3), out.shape
    # bf16 matmuls (f32 accumulation) + bf16 epilogue on v6e/v7x -> relaxed tol
    np.testing.assert_allclose(np.asarray(out), np.asarray(ref),
                               rtol=3e-2, atol=2e-2)
    print("KERNEL_OK")
</pallas_src>

<mosaic_0001>
module attributes {stable_mosaic.version = 11 : i64} {
  func.func @_classifier_kernel(%arg0: i32, %arg1: memref<512x48xbf16, #tpu.memory_space<vmem>>, %arg2: memref<48x128xbf16, #tpu.memory_space<vmem>>, %arg3: memref<4x128x128xbf16, #tpu.memory_space<vmem>>, %arg4: memref<4x128xf32, #tpu.memory_space<vmem>>, %arg5: memref<1x128xf32, #tpu.memory_space<vmem>>, %arg6: memref<8x128xf32, #tpu.memory_space<vmem>>) attributes {dimension_semantics = [#tpu.dimension_semantics<parallel>], iteration_bounds = array<i64: 1>, scalar_prefetch = 0 : i64, scratch_operands = 0 : i64, tpu.core_type = #tpu.core_type<tc>, window_params = [{transform_indices = @transform_0, window_bounds = array<i64: 512, 48>}, {pipeline_mode = #tpu.pipeline_mode<synchronous>, transform_indices = @transform_1, window_bounds = array<i64: 48, 128>}, {pipeline_mode = #tpu.pipeline_mode<synchronous>, transform_indices = @transform_2, window_bounds = array<i64: 4, 128, 128>}, {pipeline_mode = #tpu.pipeline_mode<synchronous>, transform_indices = @transform_3, window_bounds = array<i64: 4, 128>}, {pipeline_mode = #tpu.pipeline_mode<synchronous>, transform_indices = @transform_4, window_bounds = array<i64: 1, 128>}, {transform_indices = @transform_5, window_bounds = array<i64: 8, 128>}]} {
    %c0 = arith.constant 0 : index
    %c0_0 = arith.constant 0 : index
    %0 = vector.load %arg1[%c0, %c0_0] : memref<512x48xbf16, #tpu.memory_space<vmem>>, vector<512x48xbf16>
    %c0_1 = arith.constant 0 : index
    %c0_2 = arith.constant 0 : index
    %1 = vector.load %arg4[%c0_1, %c0_2] : memref<4x128xf32, #tpu.memory_space<vmem>>, vector<4x128xf32>
    %c0_3 = arith.constant 0 : index
    %c0_4 = arith.constant 0 : index
    %2 = vector.load %arg2[%c0_3, %c0_4] : memref<48x128xbf16, #tpu.memory_space<vmem>>, vector<48x128xbf16>
    %3 = vector.extract_strided_slice %1 {offsets = [0, 0], sizes = [1, 128], strides = [1, 1]} : vector<4x128xf32> to vector<1x128xf32>
    %cst = arith.constant dense<0.000000e+00> : vector<512x128xf32>
    %4 = tpu.matmul %0, %2, %cst {dimension_numbers = #tpu.dot_dimension_numbers<[1], [0], [0], [1], [0, 0, 1, 1], [], []>} : vector<512x48xbf16>, vector<48x128xbf16>, vector<512x128xf32> -> vector<512x128xf32>
    %5 = vector.broadcast %3 : vector<1x128xf32> to vector<512x128xf32>
    %6 = arith.addf %4, %5 : vector<512x128xf32>
    %cst_5 = arith.constant 1.000000e-01 : f32
    %7 = vector.broadcast %cst_5 : f32 to vector<512x128xf32>
    %8 = arith.mulf %7, %6 : vector<512x128xf32>
    %9 = arith.maximumf %6, %8 : vector<512x128xf32>
    %10 = arith.truncf %9 : vector<512x128xf32> to vector<512x128xbf16>
    %c0_6 = arith.constant 0 : index
    %c0_7 = arith.constant 0 : index
    %c0_8 = arith.constant 0 : index
    %11 = vector.load %arg3[%c0_6, %c0_7, %c0_8] : memref<4x128x128xbf16, #tpu.memory_space<vmem>>, vector<1x128x128xbf16>
    %12 = vector.shape_cast %11 : vector<1x128x128xbf16> to vector<128x128xbf16>
    %13 = vector.extract_strided_slice %1 {offsets = [1, 0], sizes = [1, 128], strides = [1, 1]} : vector<4x128xf32> to vector<1x128xf32>
    %cst_9 = arith.constant dense<0.000000e+00> : vector<512x128xf32>
    %14 = tpu.matmul %10, %12, %cst_9 {dimension_numbers = #tpu.dot_dimension_numbers<[1], [0], [0], [1], [0, 0, 1, 1], [], []>} : vector<512x128xbf16>, vector<128x128xbf16>, vector<512x128xf32> -> vector<512x128xf32>
    %15 = vector.broadcast %13 : vector<1x128xf32> to vector<512x128xf32>
    %16 = arith.addf %14, %15 : vector<512x128xf32>
    %cst_10 = arith.constant 1.000000e-01 : f32
    %17 = vector.broadcast %cst_10 : f32 to vector<512x128xf32>
    %18 = arith.mulf %17, %16 : vector<512x128xf32>
    %19 = arith.maximumf %16, %18 : vector<512x128xf32>
    %20 = arith.truncf %19 : vector<512x128xf32> to vector<512x128xbf16>
    %c1 = arith.constant 1 : index
    %c0_11 = arith.constant 0 : index
    %c0_12 = arith.constant 0 : index
    %21 = vector.load %arg3[%c1, %c0_11, %c0_12] : memref<4x128x128xbf16, #tpu.memory_space<vmem>>, vector<1x128x128xbf16>
    %22 = vector.shape_cast %21 : vector<1x128x128xbf16> to vector<128x128xbf16>
    %23 = vector.extract_strided_slice %1 {offsets = [2, 0], sizes = [1, 128], strides = [1, 1]} : vector<4x128xf32> to vector<1x128xf32>
    %cst_13 = arith.constant dense<0.000000e+00> : vector<512x128xf32>
    %24 = tpu.matmul %20, %22, %cst_13 {dimension_numbers = #tpu.dot_dimension_numbers<[1], [0], [0], [1], [0, 0, 1, 1], [], []>} : vector<512x128xbf16>, vector<128x128xbf16>, vector<512x128xf32> -> vector<512x128xf32>
    %25 = vector.broadcast %23 : vector<1x128xf32> to vector<512x128xf32>
    %26 = arith.addf %24, %25 : vector<512x128xf32>
    %cst_14 = arith.constant 1.000000e-01 : f32
    %27 = vector.broadcast %cst_14 : f32 to vector<512x128xf32>
    %28 = arith.mulf %27, %26 : vector<512x128xf32>
    %29 = arith.maximumf %26, %28 : vector<512x128xf32>
    %30 = arith.truncf %29 : vector<512x128xf32> to vector<512x128xbf16>
    %c2 = arith.constant 2 : index
    %c0_15 = arith.constant 0 : index
    %c0_16 = arith.constant 0 : index
    %31 = vector.load %arg3[%c2, %c0_15, %c0_16] : memref<4x128x128xbf16, #tpu.memory_space<vmem>>, vector<1x128x128xbf16>
    %32 = vector.shape_cast %31 : vector<1x128x128xbf16> to vector<128x128xbf16>
    %33 = vector.extract_strided_slice %1 {offsets = [3, 0], sizes = [1, 128], strides = [1, 1]} : vector<4x128xf32> to vector<1x128xf32>
    %cst_17 = arith.constant dense<0.000000e+00> : vector<512x128xf32>
    %34 = tpu.matmul %30, %32, %cst_17 {dimension_numbers = #tpu.dot_dimension_numbers<[1], [0], [0], [1], [0, 0, 1, 1], [], []>} : vector<512x128xbf16>, vector<128x128xbf16>, vector<512x128xf32> -> vector<512x128xf32>
    %35 = vector.broadcast %33 : vector<1x128xf32> to vector<512x128xf32>
    %36 = arith.addf %34, %35 : vector<512x128xf32>
    %cst_18 = arith.constant 1.000000e-01 : f32
    %37 = vector.broadcast %cst_18 : f32 to vector<512x128xf32>
    %38 = arith.mulf %37, %36 : vector<512x128xf32>
    %39 = arith.maximumf %36, %38 : vector<512x128xf32>
    %40 = vector.shape_cast %39 : vector<512x128xf32> to vector<8x64x128xf32>
    %cst_19 = arith.constant dense<0.000000e+00> : vector<8x128xf32>
    %41 = vector.multi_reduction <add>, %40, %cst_19 [1] : vector<8x64x128xf32> to vector<8x128xf32>
    %42 = arith.truncf %41 : vector<8x128xf32> to vector<8x128xbf16>
    %c3 = arith.constant 3 : index
    %c0_20 = arith.constant 0 : index
    %c0_21 = arith.constant 0 : index
    %43 = vector.load %arg3[%c3, %c0_20, %c0_21] : memref<4x128x128xbf16, #tpu.memory_space<vmem>>, vector<1x128x128xbf16>
    %44 = vector.shape_cast %43 : vector<1x128x128xbf16> to vector<128x128xbf16>
    %cst_22 = arith.constant dense<0.000000e+00> : vector<8x128xf32>
    %45 = tpu.matmul %42, %44, %cst_22 {dimension_numbers = #tpu.dot_dimension_numbers<[1], [0], [0], [1], [0, 0, 1, 1], [], []>} : vector<8x128xbf16>, vector<128x128xbf16>, vector<8x128xf32> -> vector<8x128xf32>
    %c0_23 = arith.constant 0 : index
    %c0_24 = arith.constant 0 : index
    %46 = vector.load %arg5[%c0_23, %c0_24] : memref<1x128xf32, #tpu.memory_space<vmem>>, vector<1x128xf32>
    %47 = vector.broadcast %46 : vector<1x128xf32> to vector<8x128xf32>
    %48 = arith.addf %45, %47 : vector<8x128xf32>
    %c0_25 = arith.constant 0 : index
    %c0_26 = arith.constant 0 : index
    %49 = vector.load %arg6[%c0_25, %c0_26] : memref<8x128xf32, #tpu.memory_space<vmem>>, vector<8x128xf32>
    tpu.vector_store %arg6[%c0_25, %c0_26], %48 {strides = array<i32>} : memref<8x128xf32, #tpu.memory_space<vmem>>, vector<8x128xf32>,
    return
  }
  func.func @transform_0(%arg0: i32) -> (i32, i32) {
    %c0_i32 = arith.constant 0 : i32
    %c0_i32_0 = arith.constant 0 : i32
    return %arg0, %c0_i32 : i32, i32
  }
  func.func @transform_1(%arg0: i32) -> (i32, i32) {
    %c0_i32 = arith.constant 0 : i32
    %c0_i32_0 = arith.constant 0 : i32
    %c0_i32_1 = arith.constant 0 : i32
    return %c0_i32, %c0_i32_0 : i32, i32
  }
  func.func @transform_2(%arg0: i32) -> (i32, i32, i32) {
    %c0_i32 = arith.constant 0 : i32
    %c0_i32_0 = arith.constant 0 : i32
    %c0_i32_1 = arith.constant 0 : i32
    %c0_i32_2 = arith.constant 0 : i32
    return %c0_i32, %c0_i32_0, %c0_i32_1 : i32, i32, i32
  }
  func.func @transform_3(%arg0: i32) -> (i32, i32) {
    %c0_i32 = arith.constant 0 : i32
    %c0_i32_0 = arith.constant 0 : i32
    %c0_i32_1 = arith.constant 0 : i32
    return %c0_i32, %c0_i32_0 : i32, i32
  }
  func.func @transform_4(%arg0: i32) -> (i32, i32) {
    %c0_i32 = arith.constant 0 : i32
    %c0_i32_0 = arith.constant 0 : i32
    %c0_i32_1 = arith.constant 0 : i32
    return %c0_i32, %c0_i32_0 : i32, i32
  }
  func.func @transform_5(%arg0: i32) -> (i32, i32) {
    %c0_i32 = arith.constant 0 : i32
    %c0_i32_0 = arith.constant 0 : i32
    return %arg0, %c0_i32 : i32, i32
  }
}

</mosaic_0001>

<bundles_post_ra>
// kernel: classifier_forward.1
= control target key start
LH: loop header
LB: loop body
LE: loop exit
PB: predicated region body
PF: predicated region fallthrough
CT: control target
= control target key end

     0   :  { %vm274_vm0 = vcmask 392192   ;;  %v92_v44 = vlaneseq  ;;  %vm3315_vm1 = vmmov 0   ;;  %vm2493_vm2 = vcmask 1041409   ;;  %s3878_s1 = inlined_call_operand.vmem [shape: bf16[48,128], index: 1, kind: input, shape index: {}]   ;;  %s3879_s0 = inlined_call_operand.vmem [shape: bf16[512,48], index: 0, kind: input, shape index: {}]   ;;  %s3880_s2 = inlined_call_operand.vmem [shape: bf16[4,128,128], index: 2, kind: input, shape index: {}]   ;;  %s3881_s3 = inlined_call_operand.vmem [shape: f32[4,128], index: 3, kind: input, shape index: {}]   ;;  %s3882_s4 = inlined_call_operand.vmem [shape: f32[1,128], index: 4, kind: input, shape index: {}]   ;;  %s3883_s5 = inlined_call_operand.vmem [shape: f32[8,128], index: 5, kind: output, shape index: {}]  }
   0x1   :  { %v3246_v0 = vld [vmem:[%s3878_s1] sm:$0xff]   ;;  %v3247_v1 = vld [vmem:[%s3878_s1 + $0x8] sm:$0xff]   ;;  %v3248_v3 = vld [vmem:[%s3878_s1 + $0x10] sm:$0xff]   ;;  %vm2495_vm3 = vcmask 1042434   ;;  %vm2497_vm4 = vcmask 1043459   ;;  %vm2499_vm5 = vcmask 1044484  }
   0x2   :  { %2914 = vmatprep.subr.bf16.mxu0 %v3246_v0  ;;  %v3249_v2 = vld [vmem:[%s3879_s0] sm:$0xff]   ;;  %v3250_v4 = vld [vmem:[%s3879_s0 + $0x8] sm:$0xff]   ;;  %v3251_v5 = vld [vmem:[%s3879_s0 + $0x10] sm:$0xff]   ;;  %v3510_v45 = vshrl.u32 %v92_v44, 7  ;;  %vm2501_vm6 = vcmask 1045509   ;;  %vm2503_vm7 = vcmask 1046534  }
   0x3   :  { %2915 = vmatpush3.bf16.msra.mxu0 %v3246_v0  ;;  %2920 = vmatprep.mubr.msk.bf16.mxu0 %vm274_vm0, %v3249_v2  ;;  %v3252_v6 = vld [vmem:[%s3879_s0 + $0x18] sm:$0xff]   ;;  %v3253_v7 = vld [vmem:[%s3879_s0 + $0x20] sm:$0xff]   ;;  %v3254_v8 = vld [vmem:[%s3879_s0 + $0x28] sm:$0xff]   ;;  %vm2505_vm8 = vcmask 1047559  }
   0x4   :  { %2916 = vmatprep.subr.bf16.mxu0 %v3247_v1  ;;  %v3255_v9 = vld [vmem:[%s3879_s0 + $0x30] sm:$0xff]   ;;  %v3256_v10 = vld [vmem:[%s3879_s0 + $0x38] sm:$0xff]   ;;  %v3257_v11 = vld [vmem:[%s3879_s0 + $0x40] sm:$0xff]   ;;  %v94_v46 = vsub.s32 0, %v3510_v45 }
   0x5   :  { %v3281_v12 = vld [vmem:[%s3880_s2] sm:$0xff]   ;;  %v3282_v13 = vld [vmem:[%s3880_s2 + $0x8] sm:$0xff]   ;;  %v3283_v14 = vld [vmem:[%s3880_s2 + $0x10] sm:$0xff]  }
   0x6   :  { %2984 = vmatprep.subr.bf16.mxu1 %v3281_v12  ;;  %v3258_v15 = vld [vmem:[%s3879_s0 + $0x48] sm:$0xff]   ;;  %v3259_v16 = vld [vmem:[%s3879_s0 + $0x50] sm:$0xff]   ;;  %v3284_v17 = vld [vmem:[%s3880_s2 + $0x18] sm:$0xff]  }
   0x7   :  { %2917 = vmatpush3.bf16.msra.mxu0 %v3247_v1  ;;  %2985 = vmatpush3.bf16.msra.mxu1 %v3281_v12  ;;  %v3285_v18 = vld [vmem:[%s3880_s2 + $0x20] sm:$0xff]   ;;  %v3260_v19 = vld [vmem:[%s3879_s0 + $0x58] sm:$0xff]   ;;  %v3262_v21 = vld [vmem:[%s3879_s0 + $0x68] sm:$0xff]  }
   0x8   :  { %2918 = vmatprep.subr.bf16.mxu0 %v3248_v3  ;;  %2986 = vmatprep.subr.bf16.mxu1 %v3282_v13  ;;  %v3261_v20 = vld [vmem:[%s3879_s0 + $0x60] sm:$0xff]   ;;  %v3263_v22 = vld [vmem:[%s3879_s0 + $0x70] sm:$0xff]   ;;  %v3264_v23 = vld [vmem:[%s3879_s0 + $0x78] sm:$0xff]  }
   0x9   :  { %v3265_v24 = vld [vmem:[%s3879_s0 + $0x80] sm:$0xff]   ;;  %v3266_v25 = vld [vmem:[%s3879_s0 + $0x88] sm:$0xff]   ;;  %v3267_v26 = vld [vmem:[%s3879_s0 + $0x90] sm:$0xff]  }
   0xa   :  { %v3268_v27 = vld [vmem:[%s3879_s0 + $0x98] sm:$0xff]   ;;  %v3269_v28 = vld [vmem:[%s3879_s0 + $0xa0] sm:$0xff]   ;;  %v3270_v29 = vld [vmem:[%s3879_s0 + $0xa8] sm:$0xff]  }
   0xb   :  { %2919 = vmatpush3.bf16.msra.mxu0 %v3248_v3  ;;  %2987 = vmatpush3.bf16.msra.mxu1 %v3282_v13  ;;  %v3271_v30 = vld [vmem:[%s3879_s0 + $0xb0] sm:$0xff]   ;;  %v3286_v31 = vld [vmem:[%s3880_s2 + $0x28] sm:$0xff]   ;;  %v3272_v32 = vld [vmem:[%s3879_s0 + $0xb8] sm:$0xff]  }
   0xc   :  { %2988 = vmatprep.subr.bf16.mxu1 %v3283_v14  ;;  %v3273_v33 = vld [vmem:[%s3879_s0 + $0xc0] sm:$0xff]   ;;  %v3287_v34 = vld [vmem:[%s3880_s2 + $0x30] sm:$0xff]   ;;  %v3288_v35 = vld [vmem:[%s3880_s2 + $0x38] sm:$0xff]  }
   0xd   :  { %v3274_v36 = vld [vmem:[%s3879_s0 + $0xc8] sm:$0xff]   ;;  %v3275_v37 = vld [vmem:[%s3879_s0 + $0xd0] sm:$0xff]   ;;  %v3276_v38 = vld [vmem:[%s3879_s0 + $0xd8] sm:$0xff]  }
   0xe   :  { %2921 = vmatmul.mubr.msk.bf16.vlgmr.msra.gmra.mrb[0].mxu0 %vm274_vm0, %v3250_v4  ;;  %v3277_v39 = vld [vmem:[%s3879_s0 + $0xe0] sm:$0xff]   ;;  %v3278_v40 = vld [vmem:[%s3879_s0 + $0xe8] sm:$0xff]   ;;  %v3279_v41 = vld [vmem:[%s3879_s0 + $0xf0] sm:$0xff]  }
   0xf   :  { %2924 = vmatprep.mubr.msk.bf16.mxu0 %vm274_vm0, %v3251_v5  ;;  %2989 = vmatpush3.bf16.msra.mxu1 %v3283_v14  ;;  %v3280_v42 = vld [vmem:[%s3879_s0 + $0xf8] sm:$0xff]   ;;  %v3289_v43 = vld [vmem:[%s3880_s2 + $0x40] sm:$0xff]   ;;  %v3290_v50 = vld [vmem:[%s3880_s2 + $0x48] sm:$0xff]  }
  0x10   :  { %2990 = vmatprep.subr.bf16.mxu1 %v3284_v17  ;;  %3064 = vmatprep.subr.bf16.mxu0 %v3289_v43  ;;  %v3516_v47 = vld [vmem:[%s3881_s3] sm:$0xf]  ;;  %v3291_v61 = vld [vmem:[%s3880_s2 + $0x50] sm:$0xff]   ;;  %v3292_v62 = vld [vmem:[%s3880_s2 + $0x58] sm:$0xff]  }
  0x11   :  { %3065 = vmatpush3.bf16.msra.mxu0 %v3289_v43  ;;  %v3519_v48 = vrot.slane %v3516_v47, %v94_v46 }
  0x12   :  { %3066 = vmatprep.subr.bf16.mxu0 %v3290_v50 }
  0x13   :  { %2991 = vmatpush3.bf16.msra.mxu1 %v3284_v17 }
  0x14   :  { %2992 = vmatprep.subr.bf16.mxu1 %v3285_v18 }
  0x15   :  { %3067 = vmatpush3.bf16.msra.mxu0 %v3290_v50 }
  0x16   :  { %2925 = vmatmul.mubr.msk.bf16.gmra.mrb[4].mxu0 %vm274_vm0, %v3252_v6  ;;  %3068 = vmatprep.subr.bf16.mxu0 %v3291_v61 }
  0x17   :  { %2928 = vmatprep.mubr.msk.bf16.mxu0 %vm274_vm0, %v3253_v7  ;;  %2993 = vmatpush3.bf16.msra.mxu1 %v3285_v18  ;;  %v3294_v18 = vld [vmem:[%s3880_s2 + $0x68] sm:$0xff]  }
  0x18   :  { %2994 = vmatprep.subr.bf16.mxu1 %v3286_v31 }
  0x19   :  { %3069 = vmatpush3.bf16.msra.mxu0 %v3291_v61 }
  0x1a   :  { %3070 = vmatprep.subr.bf16.mxu0 %v3292_v62 }
  0x1b   :  { %2995 = vmatpush3.bf16.msra.mxu1 %v3286_v31 }
  0x1c   :  { %2996 = vmatprep.subr.bf16.mxu1 %v3287_v34 }
  0x1d   :  { %3071 = vmatpush3.bf16.msra.mxu0 %v3292_v62 }
  0x1e   :  { %2929 = vmatmul.mubr.msk.bf16.gmra.mrb[8].mxu0 %vm274_vm0, %v3254_v8  ;;  %v3293_v8 = vld [vmem:[%s3880_s2 + $0x60] sm:$0xff]  }
  0x1f   :  { %2932 = vmatprep.mubr.msk.bf16.mxu0 %vm274_vm0, %v3255_v9  ;;  %2997 = vmatpush3.bf16.msra.mxu1 %v3287_v34 }
  0x20   :  { %2998 = vmatprep.subr.bf16.mxu1 %v3288_v35  ;;  %3072 = vmatprep.subr.bf16.mxu0 %v3293_v8 }
  0x21   :  { %3073 = vmatpush3.bf16.msra.mxu0 %v3293_v8 }
  0x22   :  { %3074 = vmatprep.subr.bf16.mxu0 %v3294_v18 }
  0x23   :  { %2999 = vmatpush3.bf16.msra.mxu1 %v3288_v35 }
  0x25   :  { %3075 = vmatpush3.bf16.msra.mxu0 %v3294_v18 }
  0x26   :  { %2933 = vmatmul.mubr.msk.bf16.gmra.mrb[12].mxu0 %vm274_vm0, %v3256_v10 }
  0x27   :  { %2936 = vmatprep.mubr.msk.bf16.mxu0 %vm274_vm0, %v3257_v11 }
  0x2e   :  { %2937 = vmatmul.mubr.msk.bf16.gmra.mrb[16].mxu0 %vm274_vm0, %v3258_v15 }
  0x2f   :  { %2940 = vmatprep.mubr.msk.bf16.mxu0 %vm274_vm0, %v3259_v16 }
  0x36   :  { %2941 = vmatmul.mubr.msk.bf16.gmra.mrb[20].mxu0 %vm274_vm0, %v3260_v19 }
  0x37   :  { %2944 = vmatprep.mubr.msk.bf16.mxu0 %vm274_vm0, %v3261_v20 }
  0x3e   :  { %2945 = vmatmul.mubr.msk.bf16.gmra.mrb[24].mxu0 %vm274_vm0, %v3262_v21 }
  0x3f   :  { %2948 = vmatprep.mubr.msk.bf16.mxu0 %vm274_vm0, %v3263_v22 }
  0x46   :  { %2949 = vmatmul.mubr.msk.bf16.gmra.mrb[28].mxu0 %vm274_vm0, %v3264_v23 }
  0x47   :  { %2952 = vmatprep.mubr.msk.bf16.mxu0 %vm274_vm0, %v3265_v24 }
  0x4e   :  { %2953 = vmatmul.mubr.msk.bf16.gmra.mrb[32].mxu0 %vm274_vm0, %v3266_v25 }
  0x4f   :  { %2956 = vmatprep.mubr.msk.bf16.mxu0 %vm274_vm0, %v3267_v26 }
  0x56   :  { %2957 = vmatmul.mubr.msk.bf16.gmra.mrb[36].mxu0 %vm274_vm0, %v3268_v27 }
  0x57   :  { %2960 = vmatprep.mubr.msk.bf16.mxu0 %vm274_vm0, %v3269_v28  ;;  %v3295_v28 = vld [vmem:[%s3880_s2 + $0x70] sm:$0xff]  }
  0x58   :  { %3076 = vmatprep.subr.bf16.mxu0 %v3295_v28 }
  0x59   :  { %3077 = vmatpush3.bf16.msra.mxu0 %v3295_v28 }
  0x5e   :  { %2961 = vmatmul.mubr.msk.bf16.gmra.mrb[40].mxu0 %vm274_vm0, %v3270_v29 }
  0x5f   :  { %2964 = vmatprep.mubr.msk.bf16.mxu0 %vm274_vm0, %v3271_v30 }
  0x66   :  { %2965 = vmatmul.mubr.msk.bf16.gmra.mrb[44].mxu0 %vm274_vm0, %v3272_v32 }
  0x67   :  { %2968 = vmatprep.mubr.msk.bf16.mxu0 %vm274_vm0, %v3273_v33 }
  0x6e   :  { %2969 = vmatmul.mubr.msk.bf16.gmra.mrb[48].mxu0 %vm274_vm0, %v3274_v36 }
  0x6f   :  { %2972 = vmatprep.mubr.msk.bf16.mxu0 %vm274_vm0, %v3275_v37 }
  0x76   :  { %2973 = vmatmul.mubr.msk.bf16.gmra.mrb[52].mxu0 %vm274_vm0, %v3276_v38  ;;  %v3296_v38 = vld [vmem:[%s3880_s2 + $0x78] sm:$0xff]  }
  0x77   :  { %2976 = vmatprep.mubr.msk.bf16.mxu0 %vm274_vm0, %v3277_v39  ;;  %3078 = vmatprep.subr.bf16.mxu0 %v3296_v38 }
  0x78   :  { %3079 = vmatpush3.bf16.msra.mxu0 %v3296_v38 }
  0x7e   :  { %2977 = vmatmul.mubr.msk.bf16.gmra.mrb[56].mxu0 %vm274_vm0, %v3278_v40 }
  0x7f   :  { %2980 = vmatprep.mubr.msk.bf16.mxu0 %vm274_vm0, %v3279_v41 }
  0x86   :  { %2981 = vmatmul.mubr.msk.bf16.gmra.mrb[60].mxu0 %vm274_vm0, %v3280_v42 }
  0xe1   :  { %v2922_v49 = vpop.f32.mrb[0].mxu0 }
  0xe2   :  { %v414_v51 = vadd.f32 %v2922_v49, %v3519_v48  ;;  %v405_v52 = vpop.f32.mrb[1].mxu0 }
  0xe3   :  { %v406_v53 = vadd.f32 %v405_v52, %v3519_v48  ;;  %v2923_v54 = vpop.f32.mrb[2].mxu0 }
  0xe4   :  { %v662_v55 = vmul.f32 0.1, %v414_v51  ;;  %v417_v56 = vadd.f32 %v2923_v54, %v3519_v48  ;;  %v408_v57 = vpop.f32.mrb[3].mxu0 }
  0xe5   :  { %v660_v58 = vmul.f32 0.1, %v406_v53  ;;  %v409_v59 = vadd.f32 %v408_v57, %v3519_v48 }
  0xe6   :  { %v663_v60 = vmul.f32 0.1, %v417_v56  ;;  %v726_v0 = vmax.f32 %v414_v51, %v662_v55 }
  0xe7   :  { %v661_v63 = vmul.f32 0.1, %v409_v59  ;;  %v724_v3 = vmax.f32 %v406_v53, %v660_v58 }
  0xe8   :  { %v727_v1 = vmax.f32 %v417_v56, %v663_v60 }
  0xe9   :  { %v2926_v2 = vpop.f32.mrb[4].mxu0  ;;  %v725_v4 = vmax.f32 %v409_v59, %v661_v63 }
  0xea   :  { %v430_v5 = vadd.f32 %v2926_v2, %v3519_v48  ;;  %v421_v6 = vpop.f32.mrb[5].mxu0  ;;  %v789_v7 = vpack.c.bf16 %v727_v1, %v726_v0 }
  0xeb   :  { %v422_v9 = vadd.f32 %v421_v6, %v3519_v48  ;;  %v2927_v10 = vpop.f32.mrb[6].mxu0  ;;  %v788_v11 = vpack.c.bf16 %v725_v4, %v724_v3 }
  0xec   :  { %v666_v12 = vmul.f32 0.1, %v430_v5  ;;  %v433_v13 = vadd.f32 %v2927_v10, %v3519_v48  ;;  %v424_v14 = vpop.f32.mrb[7].mxu0 }
  0xed   :  { %v664_v15 = vmul.f32 0.1, %v422_v9  ;;  %v425_v16 = vadd.f32 %v424_v14, %v3519_v48  ;;  %3000 = vmatprep.mubr.bf16.mxu1 %v788_v11 }
  0xee   :  { %v667_v17 = vmul.f32 0.1, %v433_v13  ;;  %3001 = vmatmul.mubr.bf16.vlgmr.msra.gmra.mrb[0].mxu1 %v789_v7  ;;  %v730_v20 = vmax.f32 %v430_v5, %v666_v12 }
  0xef   :  { %v665_v19 = vmul.f32 0.1, %v425_v16  ;;  %v728_v22 = vmax.f32 %v422_v9, %v664_v15 }
  0xf0   :  { %v731_v21 = vmax.f32 %v433_v13, %v667_v17 }
  0xf1   :  { %v729_v23 = vmax.f32 %v425_v16, %v665_v19  ;;  %v2930_v24 = vpop.f32.mrb[8].mxu0 }
  0xf2   :  { %v446_v25 = vadd.f32 %v2930_v24, %v3519_v48  ;;  %v437_v26 = vpop.f32.mrb[9].mxu0  ;;  %v791_v27 = vpack.c.bf16 %v731_v21, %v730_v20 }
  0xf3   :  { %v438_v29 = vadd.f32 %v437_v26, %v3519_v48  ;;  %v2931_v30 = vpop.f32.mrb[10].mxu0  ;;  %v790_v31 = vpack.c.bf16 %v729_v23, %v728_v22 }
  0xf4   :  { %v670_v32 = vmul.f32 0.1, %v446_v25  ;;  %v449_v33 = vadd.f32 %v2931_v30, %v3519_v48  ;;  %v440_v34 = vpop.f32.mrb[11].mxu0 }
  0xf5   :  { %v668_v35 = vmul.f32 0.1, %v438_v29  ;;  %v441_v36 = vadd.f32 %v440_v34, %v3519_v48  ;;  %3004 = vmatprep.mubr.bf16.mxu1 %v790_v31 }
  0xf6   :  { %v671_v37 = vmul.f32 0.1, %v449_v33  ;;  %3005 = vmatmul.mubr.bf16.gmra.mrb[4].mxu1 %v791_v27  ;;  %v734_v40 = vmax.f32 %v446_v25, %v670_v32 }
  0xf7   :  { %v669_v39 = vmul.f32 0.1, %v441_v36  ;;  %v732_v42 = vmax.f32 %v438_v29, %v668_v35 }
  0xf8   :  { %v735_v41 = vmax.f32 %v449_v33, %v671_v37 }
  0xf9   :  { %v733_v43 = vmax.f32 %v441_v36, %v669_v39  ;;  %v2934_v44 = vpop.f32.mrb[12].mxu0 }
  0xfa   :  { %v462_v46 = vadd.f32 %v2934_v44, %v3519_v48  ;;  %v453_v49 = vpop.f32.mrb[13].mxu0  ;;  %v793_v50 = vpack.c.bf16 %v735_v41, %v734_v40 }
  0xfb   :  { %v454_v51 = vadd.f32 %v453_v49, %v3519_v48  ;;  %v2935_v52 = vpop.f32.mrb[14].mxu0  ;;  %v792_v53 = vpack.c.bf16 %v733_v43, %v732_v42 }
  0xfc   :  { %v674_v54 = vmul.f32 0.1, %v462_v46  ;;  %v465_v55 = vadd.f32 %v2935_v52, %v3519_v48  ;;  %v456_v56 = vpop.f32.mrb[15].mxu0 }
  0xfd   :  { %v672_v57 = vmul.f32 0.1, %v454_v51  ;;  %v457_v58 = vadd.f32 %v456_v56, %v3519_v48  ;;  %3008 = vmatprep.mubr.bf16.mxu1 %v792_v53 }
  0xfe   :  { %v675_v59 = vmul.f32 0.1, %v465_v55  ;;  %3009 = vmatmul.mubr.bf16.gmra.mrb[8].mxu1 %v793_v50  ;;  %v738_v61 = vmax.f32 %v462_v46, %v674_v54 }
  0xff   :  { %v673_v60 = vmul.f32 0.1, %v457_v58  ;;  %v736_v63 = vmax.f32 %v454_v51, %v672_v57 }
 0x100   :  { %v739_v62 = vmax.f32 %v465_v55, %v675_v59 }
 0x101   :  { %v737_v0 = vmax.f32 %v457_v58, %v673_v60  ;;  %v2938_v1 = vpop.f32.mrb[16].mxu0 }
 0x102   :  { %v478_v2 = vadd.f32 %v2938_v1, %v3519_v48  ;;  %v469_v3 = vpop.f32.mrb[17].mxu0  ;;  %v795_v4 = vpack.c.bf16 %v739_v62, %v738_v61 }
 0x103   :  { %v470_v5 = vadd.f32 %v469_v3, %v3519_v48  ;;  %v2939_v6 = vpop.f32.mrb[18].mxu0  ;;  %v794_v7 = vpack.c.bf16 %v737_v0, %v736_v63 }
 0x104   :  { %v678_v8 = vmul.f32 0.1, %v478_v2  ;;  %v481_v9 = vadd.f32 %v2939_v6, %v3519_v48  ;;  %v472_v10 = vpop.f32.mrb[19].mxu0 }
 0x105   :  { %v676_v11 = vmul.f32 0.1, %v470_v5  ;;  %v473_v12 = vadd.f32 %v472_v10, %v3519_v48  ;;  %3012 = vmatprep.mubr.bf16.mxu1 %v794_v7 }
 0x106   :  { %v679_v13 = vmul.f32 0.1, %v481_v9  ;;  %3013 = vmatmul.mubr.bf16.gmra.mrb[12].mxu1 %v795_v4  ;;  %v742_v15 = vmax.f32 %v478_v2, %v678_v8 }
 0x107   :  { %v677_v14 = vmul.f32 0.1, %v473_v12  ;;  %v740_v17 = vmax.f32 %v470_v5, %v676_v11 }
 0x108   :  { %v743_v16 = vmax.f32 %v481_v9, %v679_v13 }
 0x109   :  { %v741_v18 = vmax.f32 %v473_v12, %v677_v14  ;;  %v2942_v19 = vpop.f32.mrb[20].mxu0 }
 0x10a   :  { %v494_v20 = vadd.f32 %v2942_v19, %v3519_v48  ;;  %v485_v21 = vpop.f32.mrb[21].mxu0  ;;  %v797_v22 = vpack.c.bf16 %v743_v16, %v742_v15 }
 0x10b   :  { %v486_v23 = vadd.f32 %v485_v21, %v3519_v48  ;;  %v2943_v24 = vpop.f32.mrb[22].mxu0  ;;  %v796_v25 = vpack.c.bf16 %v741_v18, %v740_v17 }
 0x10c   :  { %v682_v26 = vmul.f32 0.1, %v494_v20  ;;  %v497_v27 = vadd.f32 %v2943_v24, %v3519_v48  ;;  %v488_v28 = vpop.f32.mrb[23].mxu0 }
 0x10d   :  { %v680_v29 = vmul.f32 0.1, %v486_v23  ;;  %v489_v30 = vadd.f32 %v488_v28, %v3519_v48  ;;  %3016 = vmatprep.mubr.bf16.mxu1 %v796_v25 }
 0x10e   :  { %v683_v31 = vmul.f32 0.1, %v497_v27  ;;  %3017 = vmatmul.mubr.bf16.gmra.mrb[16].mxu1 %v797_v22  ;;  %v746_v33 = vmax.f32 %v494_v20, %v682_v26 }
 0x10f   :  { %v681_v32 = vmul.f32 0.1, %v489_v30  ;;  %v744_v35 = vmax.f32 %v486_v23, %v680_v29 }
 0x110   :  { %v747_v34 = vmax.f32 %v497_v27, %v683_v31 }
 0x111   :  { %v745_v36 = vmax.f32 %v489_v30, %v681_v32  ;;  %v2946_v37 = vpop.f32.mrb[24].mxu0 }
 0x112   :  { %v510_v38 = vadd.f32 %v2946_v37, %v3519_v48  ;;  %v501_v39 = vpop.f32.mrb[25].mxu0  ;;  %v799_v40 = vpack.c.bf16 %v747_v34, %v746_v33 }
 0x113   :  { %v502_v41 = vadd.f32 %v501_v39, %v3519_v48  ;;  %v2947_v42 = vpop.f32.mrb[26].mxu0  ;;  %v798_v43 = vpack.c.bf16 %v745_v36, %v744_v35 }
 0x114   :  { %v686_v44 = vmul.f32 0.1, %v510_v38  ;;  %v513_v46 = vadd.f32 %v2947_v42, %v3519_v48  ;;  %v504_v49 = vpop.f32.mrb[27].mxu0 }
 0x115   :  { %v684_v50 = vmul.f32 0.1, %v502_v41  ;;  %v505_v51 = vadd.f32 %v504_v49, %v3519_v48  ;;  %3020 = vmatprep.mubr.bf16.mxu1 %v798_v43 }
 0x116   :  { %v687_v52 = vmul.f32 0.1, %v513_v46  ;;  %3021 = vmatmul.mubr.bf16.gmra.mrb[20].mxu1 %v799_v40  ;;  %v750_v54 = vmax.f32 %v510_v38, %v686_v44 }
 0x117   :  { %v685_v53 = vmul.f32 0.1, %v505_v51  ;;  %v748_v56 = vmax.f32 %v502_v41, %v684_v50 }
 0x118   :  { %v751_v55 = vmax.f32 %v513_v46, %v687_v52 }
 0x119   :  { %v749_v57 = vmax.f32 %v505_v51, %v685_v53  ;;  %v2950_v58 = vpop.f32.mrb[28].mxu0 }
 0x11a   :  { %v526_v59 = vadd.f32 %v2950_v58, %v3519_v48  ;;  %v517_v60 = vpop.f32.mrb[29].mxu0  ;;  %v801_v61 = vpack.c.bf16 %v751_v55, %v750_v54 }
 0x11b   :  { %v518_v62 = vadd.f32 %v517_v60, %v3519_v48  ;;  %v2951_v63 = vpop.f32.mrb[30].mxu0  ;;  %v800_v0 = vpack.c.bf16 %v749_v57, %v748_v56 }
 0x11c   :  { %v690_v1 = vmul.f32 0.1, %v526_v59  ;;  %v529_v2 = vadd.f32 %v2951_v63, %v3519_v48  ;;  %v520_v3 = vpop.f32.mrb[31].mxu0 }
 0x11d   :  { %v688_v4 = vmul.f32 0.1, %v518_v62  ;;  %v521_v5 = vadd.f32 %v520_v3, %v3519_v48  ;;  %3024 = vmatprep.mubr.bf16.mxu1 %v800_v0 }
 0x11e   :  { %v691_v6 = vmul.f32 0.1, %v529_v2  ;;  %3025 = vmatmul.mubr.bf16.gmra.mrb[24].mxu1 %v801_v61  ;;  %v754_v8 = vmax.f32 %v526_v59, %v690_v1 }
 0x11f   :  { %v689_v7 = vmul.f32 0.1, %v521_v5  ;;  %v752_v10 = vmax.f32 %v518_v62, %v688_v4 }
 0x120   :  { %v755_v9 = vmax.f32 %v529_v2, %v691_v6 }
 0x121   :  { %v753_v11 = vmax.f32 %v521_v5, %v689_v7  ;;  %v2954_v12 = vpop.f32.mrb[32].mxu0 }
 0x122   :  { %v542_v13 = vadd.f32 %v2954_v12, %v3519_v48  ;;  %v533_v14 = vpop.f32.mrb[33].mxu0  ;;  %v803_v15 = vpack.c.bf16 %v755_v9, %v754_v8 }
 0x123   :  { %v534_v16 = vadd.f32 %v533_v14, %v3519_v48  ;;  %v2955_v17 = vpop.f32.mrb[34].mxu0  ;;  %v802_v18 = vpack.c.bf16 %v753_v11, %v752_v10 }
 0x124   :  { %v694_v19 = vmul.f32 0.1, %v542_v13  ;;  %v545_v20 = vadd.f32 %v2955_v17, %v3519_v48  ;;  %v536_v21 = vpop.f32.mrb[35].mxu0 }
 0x125   :  { %v692_v22 = vmul.f32 0.1, %v534_v16  ;;  %v537_v23 = vadd.f32 %v536_v21, %v3519_v48  ;;  %3028 = vmatprep.mubr.bf16.mxu1 %v802_v18 }
 0x126   :  { %v695_v24 = vmul.f32 0.1, %v545_v20  ;;  %3029 = vmatmul.mubr.bf16.gmra.mrb[28].mxu1 %v803_v15  ;;  %v758_v26 = vmax.f32 %v542_v13, %v694_v19 }
 0x127   :  { %v693_v25 = vmul.f32 0.1, %v537_v23  ;;  %v756_v28 = vmax.f32 %v534_v16, %v692_v22 }
 0x128   :  { %v759_v27 = vmax.f32 %v545_v20, %v695_v24 }
 0x129   :  { %v757_v29 = vmax.f32 %v537_v23, %v693_v25  ;;  %v2958_v30 = vpop.f32.mrb[36].mxu0 }
 0x12a   :  { %v558_v31 = vadd.f32 %v2958_v30, %v3519_v48  ;;  %v549_v32 = vpop.f32.mrb[37].mxu0  ;;  %v805_v33 = vpack.c.bf16 %v759_v27, %v758_v26 }
 0x12b   :  { %v550_v34 = vadd.f32 %v549_v32, %v3519_v48  ;;  %v2959_v35 = vpop.f32.mrb[38].mxu0  ;;  %v804_v36 = vpack.c.bf16 %v757_v29, %v756_v28 }
 0x12c   :  { %v698_v37 = vmul.f32 0.1, %v558_v31  ;;  %v561_v38 = vadd.f32 %v2959_v35, %v3519_v48  ;;  %v552_v39 = vpop.f32.mrb[39].mxu0 }
 0x12d   :  { %v696_v40 = vmul.f32 0.1, %v550_v34  ;;  %v553_v41 = vadd.f32 %v552_v39, %v3519_v48  ;;  %3032 = vmatprep.mubr.bf16.mxu1 %v804_v36 }
 0x12e   :  { %v699_v42 = vmul.f32 0.1, %v561_v38  ;;  %3033 = vmatmul.mubr.bf16.gmra.mrb[32].mxu1 %v805_v33  ;;  %v762_v44 = vmax.f32 %v558_v31, %v698_v37 }
 0x12f   :  { %v697_v43 = vmul.f32 0.1, %v553_v41  ;;  %v760_v49 = vmax.f32 %v550_v34, %v696_v40 }
 0x130   :  { %v763_v46 = vmax.f32 %v561_v38, %v699_v42 }
 0x131   :  { %v761_v50 = vmax.f32 %v553_v41, %v697_v43  ;;  %v2962_v51 = vpop.f32.mrb[40].mxu0 }
 0x132   :  { %v574_v52 = vadd.f32 %v2962_v51, %v3519_v48  ;;  %v565_v53 = vpop.f32.mrb[41].mxu0  ;;  %v807_v54 = vpack.c.bf16 %v763_v46, %v762_v44 }
 0x133   :  { %v566_v55 = vadd.f32 %v565_v53, %v3519_v48  ;;  %v2963_v56 = vpop.f32.mrb[42].mxu0  ;;  %v806_v57 = vpack.c.bf16 %v761_v50, %v760_v49 }
 0x134   :  { %v702_v58 = vmul.f32 0.1, %v574_v52  ;;  %v577_v59 = vadd.f32 %v2963_v56, %v3519_v48  ;;  %v568_v60 = vpop.f32.mrb[43].mxu0 }
 0x135   :  { %v700_v61 = vmul.f32 0.1, %v566_v55  ;;  %v569_v62 = vadd.f32 %v568_v60, %v3519_v48  ;;  %3036 = vmatprep.mubr.bf16.mxu1 %v806_v57 }
 0x136   :  { %v703_v63 = vmul.f32 0.1, %v577_v59  ;;  %3037 = vmatmul.mubr.bf16.gmra.mrb[36].mxu1 %v807_v54  ;;  %v766_v1 = vmax.f32 %v574_v52, %v702_v58 }
 0x137   :  { %v701_v0 = vmul.f32 0.1, %v569_v62  ;;  %v764_v3 = vmax.f32 %v566_v55, %v700_v61 }
 0x138   :  { %v767_v2 = vmax.f32 %v577_v59, %v703_v63 }
 0x139   :  { %v765_v4 = vmax.f32 %v569_v62, %v701_v0  ;;  %v2966_v5 = vpop.f32.mrb[44].mxu0 }
 0x13a   :  { %v590_v6 = vadd.f32 %v2966_v5, %v3519_v48  ;;  %v581_v7 = vpop.f32.mrb[45].mxu0  ;;  %v809_v8 = vpack.c.bf16 %v767_v2, %v766_v1 }
 0x13b   :  { %v582_v9 = vadd.f32 %v581_v7, %v3519_v48  ;;  %v2967_v10 = vpop.f32.mrb[46].mxu0  ;;  %v808_v11 = vpack.c.bf16 %v765_v4, %v764_v3 }
 0x13c   :  { %v706_v12 = vmul.f32 0.1, %v590_v6  ;;  %v593_v13 = vadd.f32 %v2967_v10, %v3519_v48  ;;  %v584_v14 = vpop.f32.mrb[47].mxu0 }
 0x13d   :  { %v704_v15 = vmul.f32 0.1, %v582_v9  ;;  %v585_v16 = vadd.f32 %v584_v14, %v3519_v48  ;;  %3040 = vmatprep.mubr.bf16.mxu1 %v808_v11 }
 0x13e   :  { %v707_v17 = vmul.f32 0.1, %v593_v13  ;;  %3041 = vmatmul.mubr.bf16.gmra.mrb[40].mxu1 %v809_v8  ;;  %v770_v19 = vmax.f32 %v590_v6, %v706_v12 }
 0x13f   :  { %v705_v18 = vmul.f32 0.1, %v585_v16  ;;  %v768_v21 = vmax.f32 %v582_v9, %v704_v15 }
 0x140   :  { %v771_v20 = vmax.f32 %v593_v13, %v707_v17 }
 0x141   :  { %v769_v22 = vmax.f32 %v585_v16, %v705_v18  ;;  %v2970_v23 = vpop.f32.mrb[48].mxu0 }
 0x142   :  { %v606_v24 = vadd.f32 %v2970_v23, %v3519_v48  ;;  %v597_v25 = vpop.f32.mrb[49].mxu0  ;;  %v811_v26 = vpack.c.bf16 %v771_v20, %v770_v19 }
 0x143   :  { %v598_v27 = vadd.f32 %v597_v25, %v3519_v48  ;;  %v2971_v28 = vpop.f32.mrb[50].mxu0  ;;  %v810_v29 = vpack.c.bf16 %v769_v22, %v768_v21 }
 0x144   :  { %v710_v30 = vmul.f32 0.1, %v606_v24  ;;  %v609_v31 = vadd.f32 %v2971_v28, %v3519_v48  ;;  %v600_v32 = vpop.f32.mrb[51].mxu0 }
 0x145   :  { %v708_v33 = vmul.f32 0.1, %v598_v27  ;;  %v601_v34 = vadd.f32 %v600_v32, %v3519_v48  ;;  %3044 = vmatprep.mubr.bf16.mxu1 %v810_v29 }
 0x146   :  { %v711_v35 = vmul.f32 0.1, %v609_v31  ;;  %3045 = vmatmul.mubr.bf16.gmra.mrb[44].mxu1 %v811_v26  ;;  %v774_v37 = vmax.f32 %v606_v24, %v710_v30 }
 0x147   :  { %v709_v36 = vmul.f32 0.1, %v601_v34  ;;  %v772_v39 = vmax.f32 %v598_v27, %v708_v33 }
 0x148   :  { %v775_v38 = vmax.f32 %v609_v31, %v711_v35 }
 0x149   :  { %v773_v40 = vmax.f32 %v601_v34, %v709_v36  ;;  %v2974_v41 = vpop.f32.mrb[52].mxu0  ;;  %v3297_v36 = vld [vmem:[%s3880_s2 + $0x80] sm:$0xff]  }
 0x14a   :  { %v622_v42 = vadd.f32 %v2974_v41, %v3519_v48  ;;  %v613_v43 = vpop.f32.mrb[53].mxu0  ;;  %v813_v44 = vpack.c.bf16 %v775_v38, %v774_v37  ;;  %3144 = vmatprep.subr.bf16.mxu1 %v3297_v36 }
 0x14b   :  { %v614_v46 = vadd.f32 %v613_v43, %v3519_v48  ;;  %v2975_v49 = vpop.f32.mrb[54].mxu0  ;;  %v812_v50 = vpack.c.bf16 %v773_v40, %v772_v39  ;;  %3145 = vmatpush3.bf16.msra.mxu1 %v3297_v36  ;;  %v3298_v39 = vld [vmem:[%s3880_s2 + $0x88] sm:$0xff]  }
 0x14c   :  { %v714_v51 = vmul.f32 0.1, %v622_v42  ;;  %v625_v52 = vadd.f32 %v2975_v49, %v3519_v48  ;;  %v616_v53 = vpop.f32.mrb[55].mxu0  ;;  %3146 = vmatprep.subr.bf16.mxu1 %v3298_v39 }
 0x14d   :  { %v712_v54 = vmul.f32 0.1, %v614_v46  ;;  %v617_v55 = vadd.f32 %v616_v53, %v3519_v48  ;;  %3048 = vmatprep.mubr.bf16.mxu1 %v812_v50  ;;  %v3300_v53 = vld [vmem:[%s3880_s2 + $0x98] sm:$0xff]  }
 0x14e   :  { %v715_v56 = vmul.f32 0.1, %v625_v52  ;;  %3049 = vmatmul.mubr.bf16.gmra.mrb[48].mxu1 %v813_v44  ;;  %v778_v58 = vmax.f32 %v622_v42, %v714_v51 }
 0x14f   :  { %v713_v57 = vmul.f32 0.1, %v617_v55  ;;  %v776_v60 = vmax.f32 %v614_v46, %v712_v54  ;;  %3147 = vmatpush3.bf16.msra.mxu1 %v3298_v39 }
 0x150   :  { %v779_v59 = vmax.f32 %v625_v52, %v715_v56  ;;  %v3299_v52 = vld [vmem:[%s3880_s2 + $0x90] sm:$0xff]  }
 0x151   :  { %v777_v61 = vmax.f32 %v617_v55, %v713_v57  ;;  %v2978_v62 = vpop.f32.mrb[56].mxu0  ;;  %3148 = vmatprep.subr.bf16.mxu1 %v3299_v52 }
 0x152   :  { %v638_v63 = vadd.f32 %v2978_v62, %v3519_v48  ;;  %v629_v0 = vpop.f32.mrb[57].mxu0  ;;  %v815_v1 = vpack.c.bf16 %v779_v59, %v778_v58 }
 0x153   :  { %v630_v2 = vadd.f32 %v629_v0, %v3519_v48  ;;  %v2979_v3 = vpop.f32.mrb[58].mxu0  ;;  %v814_v4 = vpack.c.bf16 %v777_v61, %v776_v60  ;;  %3149 = vmatpush3.bf16.msra.mxu1 %v3299_v52 }
 0x154   :  { %v718_v5 = vmul.f32 0.1, %v638_v63  ;;  %v641_v6 = vadd.f32 %v2979_v3, %v3519_v48  ;;  %v632_v7 = vpop.f32.mrb[59].mxu0  ;;  %3150 = vmatprep.subr.bf16.mxu1 %v3300_v53 }
 0x155   :  { %v716_v8 = vmul.f32 0.1, %v630_v2  ;;  %v633_v9 = vadd.f32 %v632_v7, %v3519_v48  ;;  %3052 = vmatprep.mubr.bf16.mxu1 %v814_v4 }
 0x156   :  { %v719_v10 = vmul.f32 0.1, %v641_v6  ;;  %3053 = vmatmul.mubr.bf16.gmra.mrb[52].mxu1 %v815_v1  ;;  %v782_v12 = vmax.f32 %v638_v63, %v718_v5  ;;  %v3301_v63 = vld [vmem:[%s3880_s2 + $0xa0] sm:$0xff]  }
 0x157   :  { %v717_v11 = vmul.f32 0.1, %v633_v9  ;;  %v780_v14 = vmax.f32 %v630_v2, %v716_v8  ;;  %3151 = vmatpush3.bf16.msra.mxu1 %v3300_v53 }
 0x158   :  { %v783_v13 = vmax.f32 %v641_v6, %v719_v10  ;;  %3152 = vmatprep.subr.bf16.mxu1 %v3301_v63 }
 0x159   :  { %v781_v15 = vmax.f32 %v633_v9, %v717_v11  ;;  %v2982_v16 = vpop.f32.mrb[60].mxu0  ;;  %v3302_v9 = vld [vmem:[%s3880_s2 + $0xa8] sm:$0xff]  }
 0x15a   :  { %v654_v17 = vadd.f32 %v2982_v16, %v3519_v48  ;;  %v645_v18 = vpop.f32.mrb[61].mxu0  ;;  %v817_v19 = vpack.c.bf16 %v783_v13, %v782_v12 }
 0x15b   :  { %v646_v20 = vadd.f32 %v645_v18, %v3519_v48  ;;  %v2983_v21 = vpop.f32.mrb[62].mxu0  ;;  %v816_v22 = vpack.c.bf16 %v781_v15, %v780_v14  ;;  %3153 = vmatpush3.bf16.msra.mxu1 %v3301_v63 }
 0x15c   :  { %v722_v23 = vmul.f32 0.1, %v654_v17  ;;  %v657_v24 = vadd.f32 %v2983_v21, %v3519_v48  ;;  %v648_v25 = vpop.f32.mrb[63].mxu0  ;;  %3154 = vmatprep.subr.bf16.mxu1 %v3302_v9 }
 0x15d   :  { %v720_v26 = vmul.f32 0.1, %v646_v20  ;;  %v649_v27 = vadd.f32 %v648_v25, %v3519_v48  ;;  %3056 = vmatprep.mubr.bf16.mxu1 %v816_v22  ;;  %v838_v48 = vsub.s32 1, %v3510_v45 }
 0x15e   :  { %v723_v28 = vmul.f32 0.1, %v657_v24  ;;  %3057 = vmatmul.mubr.bf16.gmra.mrb[56].mxu1 %v817_v19  ;;  %v786_v30 = vmax.f32 %v654_v17, %v722_v23  ;;  %v3303_v19 = vld [vmem:[%s3880_s2 + $0xb0] sm:$0xff]  }
 0x15f   :  { %v721_v29 = vmul.f32 0.1, %v649_v27  ;;  %v784_v32 = vmax.f32 %v646_v20, %v720_v26  ;;  %v3611_v37 = vrot.slane %v3516_v47, %v838_v48  ;;  %3155 = vmatpush3.bf16.msra.mxu1 %v3302_v9 }
 0x160   :  { %v787_v31 = vmax.f32 %v657_v24, %v723_v28  ;;  %3156 = vmatprep.subr.bf16.mxu1 %v3303_v19 }
 0x161   :  { %v785_v33 = vmax.f32 %v649_v27, %v721_v29  ;;  %v3304_v29 = vld [vmem:[%s3880_s2 + $0xb8] sm:$0xff]  }
 0x162   :  { %v819_v34 = vpack.c.bf16 %v787_v31, %v786_v30 }
 0x163   :  { %v818_v35 = vpack.c.bf16 %v785_v33, %v784_v32  ;;  %3157 = vmatpush3.bf16.msra.mxu1 %v3303_v19 }
 0x164   :  { %3158 = vmatprep.subr.bf16.mxu1 %v3304_v29 }
 0x165   :  { %3060 = vmatprep.mubr.bf16.mxu1 %v818_v35 }
 0x166   :  { %3061 = vmatmul.mubr.bf16.gmra.mrb[60].mxu1 %v819_v34 }
 0x167   :  { %3159 = vmatpush3.bf16.msra.mxu1 %v3304_v29 }
 0x1c1   :  { %v3002_v38 = vpop.f32.mrb[0].mxu1 }
 0x1c2   :  { %v931_v40 = vadd.f32 %v3002_v38, %v3611_v37  ;;  %v922_v41 = vpop.f32.mrb[1].mxu1 }
 0x1c3   :  { %v923_v42 = vadd.f32 %v922_v41, %v3611_v37  ;;  %v3003_v43 = vpop.f32.mrb[2].mxu1 }
 0x1c4   :  { %v1179_v44 = vmul.f32 0.1, %v931_v40  ;;  %v934_v46 = vadd.f32 %v3003_v43, %v3611_v37  ;;  %v925_v49 = vpop.f32.mrb[3].mxu1 }
 0x1c5   :  { %v1177_v50 = vmul.f32 0.1, %v923_v42  ;;  %v926_v47 = vadd.f32 %v925_v49, %v3611_v37 }
 0x1c6   :  { %v1180_v51 = vmul.f32 0.1, %v934_v46  ;;  %v1243_v55 = vmax.f32 %v931_v40, %v1179_v44 }
 0x1c7   :  { %v1178_v54 = vmul.f32 0.1, %v926_v47  ;;  %v1241_v57 = vmax.f32 %v923_v42, %v1177_v50 }
 0x1c8   :  { %v1244_v56 = vmax.f32 %v934_v46, %v1180_v51 }
 0x1c9   :  { %v1242_v58 = vmax.f32 %v926_v47, %v1178_v54  ;;  %v3006_v59 = vpop.f32.mrb[4].mxu1 }
 0x1ca   :  { %v1306_v60 = vpack.c.bf16 %v1244_v56, %v1243_v55  ;;  %v947_v61 = vadd.f32 %v3006_v59, %v3611_v37  ;;  %v938_v62 = vpop.f32.mrb[5].mxu1 }
 0x1cb   :  { %v939_v0 = vadd.f32 %v938_v62, %v3611_v37  ;;  %v3007_v1 = vpop.f32.mrb[6].mxu1  ;;  %v1305_v2 = vpack.c.bf16 %v1242_v58, %v1241_v57 }
 0x1cc   :  { %v1183_v3 = vmul.f32 0.1, %v947_v61  ;;  %v950_v4 = vadd.f32 %v3007_v1, %v3611_v37  ;;  %v941_v5 = vpop.f32.mrb[7].mxu1 }
 0x1cd   :  { %v1181_v6 = vmul.f32 0.1, %v939_v0  ;;  %v942_v7 = vadd.f32 %v941_v5, %v3611_v37  ;;  %3080 = vmatprep.mubr.bf16.mxu0 %v1305_v2 }
 0x1ce   :  { %v1184_v8 = vmul.f32 0.1, %v950_v4  ;;  %3081 = vmatmul.mubr.bf16.vlgmr.msra.gmra.mrb[64].mxu0 %v1306_v60  ;;  %v1247_v11 = vmax.f32 %v947_v61, %v1183_v3 }
 0x1cf   :  { %v1182_v10 = vmul.f32 0.1, %v942_v7  ;;  %v1245_v13 = vmax.f32 %v939_v0, %v1181_v6 }
 0x1d0   :  { %v1248_v12 = vmax.f32 %v950_v4, %v1184_v8 }
 0x1d1   :  { %v1246_v14 = vmax.f32 %v942_v7, %v1182_v10  ;;  %v3010_v15 = vpop.f32.mrb[8].mxu1 }
 0x1d2   :  { %v963_v16 = vadd.f32 %v3010_v15, %v3611_v37  ;;  %v954_v17 = vpop.f32.mrb[9].mxu1  ;;  %v1308_v18 = vpack.c.bf16 %v1248_v12, %v1247_v11 }
 0x1d3   :  { %v955_v20 = vadd.f32 %v954_v17, %v3611_v37  ;;  %v3011_v21 = vpop.f32.mrb[10].mxu1  ;;  %v1307_v22 = vpack.c.bf16 %v1246_v14, %v1245_v13 }
 0x1d4   :  { %v1187_v23 = vmul.f32 0.1, %v963_v16  ;;  %v966_v24 = vadd.f32 %v3011_v21, %v3611_v37  ;;  %v957_v25 = vpop.f32.mrb[11].mxu1 }
 0x1d5   :  { %v1185_v26 = vmul.f32 0.1, %v955_v20  ;;  %v958_v27 = vadd.f32 %v957_v25, %v3611_v37  ;;  %3084 = vmatprep.mubr.bf16.mxu0 %v1307_v22 }
 0x1d6   :  { %v1188_v28 = vmul.f32 0.1, %v966_v24  ;;  %3085 = vmatmul.mubr.bf16.gmra.mrb[68].mxu0 %v1308_v18  ;;  %v1251_v31 = vmax.f32 %v963_v16, %v1187_v23 }
 0x1d7   :  { %v1186_v30 = vmul.f32 0.1, %v958_v27  ;;  %v1249_v33 = vmax.f32 %v955_v20, %v1185_v26 }
 0x1d8   :  { %v1252_v32 = vmax.f32 %v966_v24, %v1188_v28 }
 0x1d9   :  { %v1250_v34 = vmax.f32 %v958_v27, %v1186_v30  ;;  %v3014_v35 = vpop.f32.mrb[12].mxu1 }
 0x1da   :  { %v979_v36 = vadd.f32 %v3014_v35, %v3611_v37  ;;  %v970_v48 = vpop.f32.mrb[13].mxu1  ;;  %v1310_v38 = vpack.c.bf16 %v1252_v32, %v1251_v31 }
 0x1db   :  { %v971_v39 = vadd.f32 %v970_v48, %v3611_v37  ;;  %v3015_v40 = vpop.f32.mrb[14].mxu1  ;;  %v1309_v41 = vpack.c.bf16 %v1250_v34, %v1249_v33 }
 0x1dc   :  { %v1191_v42 = vmul.f32 0.1, %v979_v36  ;;  %v982_v43 = vadd.f32 %v3015_v40, %v3611_v37  ;;  %v973_v44 = vpop.f32.mrb[15].mxu1 }
 0x1dd   :  { %v1189_v46 = vmul.f32 0.1, %v971_v39  ;;  %v974_v49 = vadd.f32 %v973_v44, %v3611_v37  ;;  %3088 = vmatprep.mubr.bf16.mxu0 %v1309_v41 }
 0x1de   :  { %v1192_v50 = vmul.f32 0.1, %v982_v43  ;;  %3089 = vmatmul.mubr.bf16.gmra.mrb[72].mxu0 %v1310_v38  ;;  %v1255_v51 = vmax.f32 %v979_v36, %v1191_v42 }
 0x1df   :  { %v1190_v47 = vmul.f32 0.1, %v974_v49  ;;  %v1253_v53 = vmax.f32 %v971_v39, %v1189_v46 }
 0x1e0   :  { %v1256_v52 = vmax.f32 %v982_v43, %v1192_v50 }
 0x1e1   :  { %v1254_v54 = vmax.f32 %v974_v49, %v1190_v47  ;;  %v3018_v55 = vpop.f32.mrb[16].mxu1 }
 0x1e2   :  { %v995_v56 = vadd.f32 %v3018_v55, %v3611_v37  ;;  %v986_v57 = vpop.f32.mrb[17].mxu1  ;;  %v1312_v58 = vpack.c.bf16 %v1256_v52, %v1255_v51 }
 0x1e3   :  { %v987_v59 = vadd.f32 %v986_v57, %v3611_v37  ;;  %v3019_v60 = vpop.f32.mrb[18].mxu1  ;;  %v1311_v61 = vpack.c.bf16 %v1254_v54, %v1253_v53 }
 0x1e4   :  { %v1195_v62 = vmul.f32 0.1, %v995_v56  ;;  %v998_v63 = vadd.f32 %v3019_v60, %v3611_v37  ;;  %v989_v0 = vpop.f32.mrb[19].mxu1 }
 0x1e5   :  { %v1193_v1 = vmul.f32 0.1, %v987_v59  ;;  %v990_v2 = vadd.f32 %v989_v0, %v3611_v37  ;;  %3092 = vmatprep.mubr.bf16.mxu0 %v1311_v61 }
 0x1e6   :  { %v1196_v3 = vmul.f32 0.1, %v998_v63  ;;  %3093 = vmatmul.mubr.bf16.gmra.mrb[76].mxu0 %v1312_v58  ;;  %v1259_v5 = vmax.f32 %v995_v56, %v1195_v62 }
 0x1e7   :  { %v1194_v4 = vmul.f32 0.1, %v990_v2  ;;  %v1257_v7 = vmax.f32 %v987_v59, %v1193_v1 }
 0x1e8   :  { %v1260_v6 = vmax.f32 %v998_v63, %v1196_v3 }
 0x1e9   :  { %v1258_v8 = vmax.f32 %v990_v2, %v1194_v4  ;;  %v3022_v9 = vpop.f32.mrb[20].mxu1 }
 0x1ea   :  { %v1011_v10 = vadd.f32 %v3022_v9, %v3611_v37  ;;  %v1002_v11 = vpop.f32.mrb[21].mxu1  ;;  %v1314_v12 = vpack.c.bf16 %v1260_v6, %v1259_v5 }
 0x1eb   :  { %v1003_v13 = vadd.f32 %v1002_v11, %v3611_v37  ;;  %v3023_v14 = vpop.f32.mrb[22].mxu1  ;;  %v1313_v15 = vpack.c.bf16 %v1258_v8, %v1257_v7 }
 0x1ec   :  { %v1199_v16 = vmul.f32 0.1, %v1011_v10  ;;  %v1014_v17 = vadd.f32 %v3023_v14, %v3611_v37  ;;  %v1005_v18 = vpop.f32.mrb[23].mxu1 }
 0x1ed   :  { %v1197_v19 = vmul.f32 0.1, %v1003_v13  ;;  %v1006_v20 = vadd.f32 %v1005_v18, %v3611_v37  ;;  %3096 = vmatprep.mubr.bf16.mxu0 %v1313_v15 }
 0x1ee   :  { %v1200_v21 = vmul.f32 0.1, %v1014_v17  ;;  %3097 = vmatmul.mubr.bf16.gmra.mrb[80].mxu0 %v1314_v12  ;;  %v1263_v23 = vmax.f32 %v1011_v10, %v1199_v16 }
 0x1ef   :  { %v1198_v22 = vmul.f32 0.1, %v1006_v20  ;;  %v1261_v25 = vmax.f32 %v1003_v13, %v1197_v19 }
 0x1f0   :  { %v1264_v24 = vmax.f32 %v1014_v17, %v1200_v21 }
 0x1f1   :  { %v1262_v26 = vmax.f32 %v1006_v20, %v1198_v22  ;;  %v3026_v27 = vpop.f32.mrb[24].mxu1 }
 0x1f2   :  { %v1027_v28 = vadd.f32 %v3026_v27, %v3611_v37  ;;  %v1018_v29 = vpop.f32.mrb[25].mxu1  ;;  %v1316_v30 = vpack.c.bf16 %v1264_v24, %v1263_v23 }
 0x1f3   :  { %v1019_v31 = vadd.f32 %v1018_v29, %v3611_v37  ;;  %v3027_v32 = vpop.f32.mrb[26].mxu1  ;;  %v1315_v33 = vpack.c.bf16 %v1262_v26, %v1261_v25 }
 0x1f4   :  { %v1203_v34 = vmul.f32 0.1, %v1027_v28  ;;  %v1030_v35 = vadd.f32 %v3027_v32, %v3611_v37  ;;  %v1021_v36 = vpop.f32.mrb[27].mxu1 }
 0x1f5   :  { %v1201_v48 = vmul.f32 0.1, %v1019_v31  ;;  %v1022_v38 = vadd.f32 %v1021_v36, %v3611_v37  ;;  %3100 = vmatprep.mubr.bf16.mxu0 %v1315_v33 }
 0x1f6   :  { %v1204_v39 = vmul.f32 0.1, %v1030_v35  ;;  %3101 = vmatmul.mubr.bf16.gmra.mrb[84].mxu0 %v1316_v30  ;;  %v1267_v41 = vmax.f32 %v1027_v28, %v1203_v34 }
 0x1f7   :  { %v1202_v40 = vmul.f32 0.1, %v1022_v38  ;;  %v1265_v43 = vmax.f32 %v1019_v31, %v1201_v48 }
 0x1f8   :  { %v1268_v42 = vmax.f32 %v1030_v35, %v1204_v39 }
 0x1f9   :  { %v1266_v44 = vmax.f32 %v1022_v38, %v1202_v40  ;;  %v3030_v46 = vpop.f32.mrb[28].mxu1 }
 0x1fa   :  { %v1043_v49 = vadd.f32 %v3030_v46, %v3611_v37  ;;  %v1034_v50 = vpop.f32.mrb[29].mxu1  ;;  %v1318_v47 = vpack.c.bf16 %v1268_v42, %v1267_v41 }
 0x1fb   :  { %v1035_v51 = vadd.f32 %v1034_v50, %v3611_v37  ;;  %v3031_v52 = vpop.f32.mrb[30].mxu1  ;;  %v1317_v53 = vpack.c.bf16 %v1266_v44, %v1265_v43 }
 0x1fc   :  { %v1207_v54 = vmul.f32 0.1, %v1043_v49  ;;  %v1046_v55 = vadd.f32 %v3031_v52, %v3611_v37  ;;  %v1037_v56 = vpop.f32.mrb[31].mxu1 }
 0x1fd   :  { %v1205_v57 = vmul.f32 0.1, %v1035_v51  ;;  %v1038_v58 = vadd.f32 %v1037_v56, %v3611_v37  ;;  %3104 = vmatprep.mubr.bf16.mxu0 %v1317_v53 }
 0x1fe   :  { %v1208_v59 = vmul.f32 0.1, %v1046_v55  ;;  %3105 = vmatmul.mubr.bf16.gmra.mrb[88].mxu0 %v1318_v47  ;;  %v1271_v61 = vmax.f32 %v1043_v49, %v1207_v54 }
 0x1ff   :  { %v1206_v60 = vmul.f32 0.1, %v1038_v58  ;;  %v1269_v63 = vmax.f32 %v1035_v51, %v1205_v57 }
 0x200   :  { %v1272_v62 = vmax.f32 %v1046_v55, %v1208_v59 }
 0x201   :  { %v1270_v0 = vmax.f32 %v1038_v58, %v1206_v60  ;;  %v3034_v1 = vpop.f32.mrb[32].mxu1 }
 0x202   :  { %v1059_v2 = vadd.f32 %v3034_v1, %v3611_v37  ;;  %v1050_v3 = vpop.f32.mrb[33].mxu1  ;;  %v1320_v4 = vpack.c.bf16 %v1272_v62, %v1271_v61 }
 0x203   :  { %v1051_v5 = vadd.f32 %v1050_v3, %v3611_v37  ;;  %v3035_v6 = vpop.f32.mrb[34].mxu1  ;;  %v1319_v7 = vpack.c.bf16 %v1270_v0, %v1269_v63 }
 0x204   :  { %v1211_v8 = vmul.f32 0.1, %v1059_v2  ;;  %v1062_v9 = vadd.f32 %v3035_v6, %v3611_v37  ;;  %v1053_v10 = vpop.f32.mrb[35].mxu1 }
 0x205   :  { %v1209_v11 = vmul.f32 0.1, %v1051_v5  ;;  %v1054_v12 = vadd.f32 %v1053_v10, %v3611_v37  ;;  %3108 = vmatprep.mubr.bf16.mxu0 %v1319_v7 }
 0x206   :  { %v1212_v13 = vmul.f32 0.1, %v1062_v9  ;;  %3109 = vmatmul.mubr.bf16.gmra.mrb[92].mxu0 %v1320_v4  ;;  %v1275_v15 = vmax.f32 %v1059_v2, %v1211_v8 }
 0x207   :  { %v1210_v14 = vmul.f32 0.1, %v1054_v12  ;;  %v1273_v17 = vmax.f32 %v1051_v5, %v1209_v11 }
 0x208   :  { %v1276_v16 = vmax.f32 %v1062_v9, %v1212_v13 }
 0x209   :  { %v1274_v18 = vmax.f32 %v1054_v12, %v1210_v14  ;;  %v3038_v19 = vpop.f32.mrb[36].mxu1 }
 0x20a   :  { %v1075_v20 = vadd.f32 %v3038_v19, %v3611_v37  ;;  %v1066_v21 = vpop.f32.mrb[37].mxu1  ;;  %v1322_v22 = vpack.c.bf16 %v1276_v16, %v1275_v15 }
 0x20b   :  { %v1067_v23 = vadd.f32 %v1066_v21, %v3611_v37  ;;  %v3039_v24 = vpop.f32.mrb[38].mxu1  ;;  %v1321_v25 = vpack.c.bf16 %v1274_v18, %v1273_v17 }
 0x20c   :  { %v1215_v26 = vmul.f32 0.1, %v1075_v20  ;;  %v1078_v27 = vadd.f32 %v3039_v24, %v3611_v37  ;;  %v1069_v28 = vpop.f32.mrb[39].mxu1 }
 0x20d   :  { %v1213_v29 = vmul.f32 0.1, %v1067_v23  ;;  %v1070_v30 = vadd.f32 %v1069_v28, %v3611_v37  ;;  %3112 = vmatprep.mubr.bf16.mxu0 %v1321_v25 }
 0x20e   :  { %v1216_v31 = vmul.f32 0.1, %v1078_v27  ;;  %3113 = vmatmul.mubr.bf16.gmra.mrb[96].mxu0 %v1322_v22  ;;  %v1279_v33 = vmax.f32 %v1075_v20, %v1215_v26 }
 0x20f   :  { %v1214_v32 = vmul.f32 0.1, %v1070_v30  ;;  %v1277_v35 = vmax.f32 %v1067_v23, %v1213_v29 }
 0x210   :  { %v1280_v34 = vmax.f32 %v1078_v27, %v1216_v31 }
 0x211   :  { %v1278_v36 = vmax.f32 %v1070_v30, %v1214_v32  ;;  %v3042_v48 = vpop.f32.mrb[40].mxu1 }
 0x212   :  { %v1091_v38 = vadd.f32 %v3042_v48, %v3611_v37  ;;  %v1082_v39 = vpop.f32.mrb[41].mxu1  ;;  %v1324_v40 = vpack.c.bf16 %v1280_v34, %v1279_v33 }
 0x213   :  { %v1083_v41 = vadd.f32 %v1082_v39, %v3611_v37  ;;  %v3043_v42 = vpop.f32.mrb[42].mxu1  ;;  %v1323_v43 = vpack.c.bf16 %v1278_v36, %v1277_v35 }
 0x214   :  { %v1219_v44 = vmul.f32 0.1, %v1091_v38  ;;  %v1094_v46 = vadd.f32 %v3043_v42, %v3611_v37  ;;  %v1085_v49 = vpop.f32.mrb[43].mxu1 }
 0x215   :  { %v1217_v50 = vmul.f32 0.1, %v1083_v41  ;;  %v1086_v47 = vadd.f32 %v1085_v49, %v3611_v37  ;;  %3116 = vmatprep.mubr.bf16.mxu0 %v1323_v43 }
 0x216   :  { %v1220_v51 = vmul.f32 0.1, %v1094_v46  ;;  %3117 = vmatmul.mubr.bf16.gmra.mrb[100].mxu0 %v1324_v40  ;;  %v1283_v53 = vmax.f32 %v1091_v38, %v1219_v44 }
 0x217   :  { %v1218_v52 = vmul.f32 0.1, %v1086_v47  ;;  %v1281_v55 = vmax.f32 %v1083_v41, %v1217_v50 }
 0x218   :  { %v1284_v54 = vmax.f32 %v1094_v46, %v1220_v51 }
 0x219   :  { %v1282_v56 = vmax.f32 %v1086_v47, %v1218_v52  ;;  %v3046_v57 = vpop.f32.mrb[44].mxu1 }
 0x21a   :  { %v1107_v58 = vadd.f32 %v3046_v57, %v3611_v37  ;;  %v1098_v59 = vpop.f32.mrb[45].mxu1  ;;  %v1326_v60 = vpack.c.bf16 %v1284_v54, %v1283_v53 }
 0x21b   :  { %v1099_v61 = vadd.f32 %v1098_v59, %v3611_v37  ;;  %v3047_v62 = vpop.f32.mrb[46].mxu1  ;;  %v1325_v63 = vpack.c.bf16 %v1282_v56, %v1281_v55 }
 0x21c   :  { %v1223_v0 = vmul.f32 0.1, %v1107_v58  ;;  %v1110_v1 = vadd.f32 %v3047_v62, %v3611_v37  ;;  %v1101_v2 = vpop.f32.mrb[47].mxu1 }
 0x21d   :  { %v1221_v3 = vmul.f32 0.1, %v1099_v61  ;;  %v1102_v4 = vadd.f32 %v1101_v2, %v3611_v37  ;;  %3120 = vmatprep.mubr.bf16.mxu0 %v1325_v63 }
 0x21e   :  { %v1224_v5 = vmul.f32 0.1, %v1110_v1  ;;  %3121 = vmatmul.mubr.bf16.gmra.mrb[104].mxu0 %v1326_v60  ;;  %v1287_v7 = vmax.f32 %v1107_v58, %v1223_v0 }
 0x21f   :  { %v1222_v6 = vmul.f32 0.1, %v1102_v4  ;;  %v1285_v9 = vmax.f32 %v1099_v61, %v1221_v3 }
 0x220   :  { %v1288_v8 = vmax.f32 %v1110_v1, %v1224_v5 }
 0x221   :  { %v1286_v10 = vmax.f32 %v1102_v4, %v1222_v6  ;;  %v3050_v11 = vpop.f32.mrb[48].mxu1 }
 0x222   :  { %v1123_v12 = vadd.f32 %v3050_v11, %v3611_v37  ;;  %v1114_v13 = vpop.f32.mrb[49].mxu1  ;;  %v1328_v14 = vpack.c.bf16 %v1288_v8, %v1287_v7 }
 0x223   :  { %v1115_v15 = vadd.f32 %v1114_v13, %v3611_v37  ;;  %v3051_v16 = vpop.f32.mrb[50].mxu1  ;;  %v1327_v17 = vpack.c.bf16 %v1286_v10, %v1285_v9 }
 0x224   :  { %v1227_v18 = vmul.f32 0.1, %v1123_v12  ;;  %v1126_v19 = vadd.f32 %v3051_v16, %v3611_v37  ;;  %v1117_v20 = vpop.f32.mrb[51].mxu1 }
 0x225   :  { %v1225_v21 = vmul.f32 0.1, %v1115_v15  ;;  %v1118_v22 = vadd.f32 %v1117_v20, %v3611_v37  ;;  %3124 = vmatprep.mubr.bf16.mxu0 %v1327_v17 }
 0x226   :  { %v1228_v23 = vmul.f32 0.1, %v1126_v19  ;;  %3125 = vmatmul.mubr.bf16.gmra.mrb[108].mxu0 %v1328_v14  ;;  %v1291_v25 = vmax.f32 %v1123_v12, %v1227_v18 }
 0x227   :  { %v1226_v24 = vmul.f32 0.1, %v1118_v22  ;;  %v1289_v27 = vmax.f32 %v1115_v15, %v1225_v21 }
 0x228   :  { %v1292_v26 = vmax.f32 %v1126_v19, %v1228_v23  ;;  %v1356_v23 = vsub.s32 2, %v3510_v45 }
 0x229   :  { %v1290_v28 = vmax.f32 %v1118_v22, %v1226_v24  ;;  %v3054_v29 = vpop.f32.mrb[52].mxu1  ;;  %v3702_v24 = vld [vmem:[%s3881_s3] sm:$0xf] }
 0x22a   :  { %v1139_v30 = vadd.f32 %v3054_v29, %v3611_v37  ;;  %v1130_v31 = vpop.f32.mrb[53].mxu1  ;;  %v1330_v32 = vpack.c.bf16 %v1292_v26, %v1291_v25 }
 0x22b   :  { %v1131_v33 = vadd.f32 %v1130_v31, %v3611_v37  ;;  %v3055_v34 = vpop.f32.mrb[54].mxu1  ;;  %v1329_v35 = vpack.c.bf16 %v1290_v28, %v1289_v27 }
 0x22c   :  { %v1231_v36 = vmul.f32 0.1, %v1139_v30  ;;  %v1142_v48 = vadd.f32 %v3055_v34, %v3611_v37  ;;  %v1133_v38 = vpop.f32.mrb[55].mxu1 }
 0x22d   :  { %v1229_v39 = vmul.f32 0.1, %v1131_v33  ;;  %v1134_v40 = vadd.f32 %v1133_v38, %v3611_v37  ;;  %3128 = vmatprep.mubr.bf16.mxu0 %v1329_v35 }
 0x22e   :  { %v1232_v41 = vmul.f32 0.1, %v1142_v48  ;;  %3129 = vmatmul.mubr.bf16.gmra.mrb[112].mxu0 %v1330_v32  ;;  %v1295_v43 = vmax.f32 %v1139_v30, %v1231_v36 }
 0x22f   :  { %v1230_v42 = vmul.f32 0.1, %v1134_v40  ;;  %v1293_v46 = vmax.f32 %v1131_v33, %v1229_v39 }
 0x230   :  { %v1296_v44 = vmax.f32 %v1142_v48, %v1232_v41 }
 0x231   :  { %v1294_v49 = vmax.f32 %v1134_v40, %v1230_v42  ;;  %v3058_v50 = vpop.f32.mrb[56].mxu1 }
 0x232   :  { %v1155_v47 = vadd.f32 %v3058_v50, %v3611_v37  ;;  %v1146_v51 = vpop.f32.mrb[57].mxu1  ;;  %v1332_v52 = vpack.c.bf16 %v1296_v44, %v1295_v43 }
 0x233   :  { %v1147_v53 = vadd.f32 %v1146_v51, %v3611_v37  ;;  %v3059_v54 = vpop.f32.mrb[58].mxu1  ;;  %v1331_v55 = vpack.c.bf16 %v1294_v49, %v1293_v46 }
 0x234   :  { %v1235_v56 = vmul.f32 0.1, %v1155_v47  ;;  %v1158_v57 = vadd.f32 %v3059_v54, %v3611_v37  ;;  %v1149_v58 = vpop.f32.mrb[59].mxu1 }
 0x235   :  { %v1233_v59 = vmul.f32 0.1, %v1147_v53  ;;  %v1150_v60 = vadd.f32 %v1149_v58, %v3611_v37  ;;  %3132 = vmatprep.mubr.bf16.mxu0 %v1331_v55 }
 0x236   :  { %v1236_v61 = vmul.f32 0.1, %v1158_v57  ;;  %3133 = vmatmul.mubr.bf16.gmra.mrb[116].mxu0 %v1332_v52  ;;  %v1299_v63 = vmax.f32 %v1155_v47, %v1235_v56 }
 0x237   :  { %v1234_v62 = vmul.f32 0.1, %v1150_v60  ;;  %v1297_v1 = vmax.f32 %v1147_v53, %v1233_v59 }
 0x238   :  { %v1300_v0 = vmax.f32 %v1158_v57, %v1236_v61 }
 0x239   :  { %v1298_v2 = vmax.f32 %v1150_v60, %v1234_v62  ;;  %v3062_v3 = vpop.f32.mrb[60].mxu1 }
 0x23a   :  { %v1171_v4 = vadd.f32 %v3062_v3, %v3611_v37  ;;  %v1162_v5 = vpop.f32.mrb[61].mxu1  ;;  %v1334_v6 = vpack.c.bf16 %v1300_v0, %v1299_v63 }
 0x23b   :  { %v1163_v7 = vadd.f32 %v1162_v5, %v3611_v37  ;;  %v3063_v8 = vpop.f32.mrb[62].mxu1  ;;  %v1333_v9 = vpack.c.bf16 %v1298_v2, %v1297_v1 }
 0x23c   :  { %v1239_v10 = vmul.f32 0.1, %v1171_v4  ;;  %v1174_v11 = vadd.f32 %v3063_v8, %v3611_v37  ;;  %v1165_v12 = vpop.f32.mrb[63].mxu1 }
 0x23d   :  { %v1237_v13 = vmul.f32 0.1, %v1163_v7  ;;  %v1166_v14 = vadd.f32 %v1165_v12, %v3611_v37  ;;  %3136 = vmatprep.mubr.bf16.mxu0 %v1333_v9  ;;  %v3705_v37 = vrot.slane %v3702_v24, %v1356_v23 }
 0x23e   :  { %v1240_v15 = vmul.f32 0.1, %v1174_v11  ;;  %3137 = vmatmul.mubr.bf16.gmra.mrb[120].mxu0 %v1334_v6  ;;  %v1303_v17 = vmax.f32 %v1171_v4, %v1239_v10 }
 0x23f   :  { %v1238_v16 = vmul.f32 0.1, %v1166_v14  ;;  %v1301_v19 = vmax.f32 %v1163_v7, %v1237_v13 }
 0x240   :  { %v1304_v18 = vmax.f32 %v1174_v11, %v1240_v15 }
 0x241   :  { %v1302_v20 = vmax.f32 %v1166_v14, %v1238_v16 }
 0x242   :  { %v1336_v21 = vpack.c.bf16 %v1304_v18, %v1303_v17 }
 0x243   :  { %v1335_v22 = vpack.c.bf16 %v1302_v20, %v1301_v19 }
 0x245   :  { %3140 = vmatprep.mubr.bf16.mxu0 %v1335_v22 }
 0x246   :  { %3141 = vmatmul.mubr.bf16.gmra.mrb[124].mxu0 %v1336_v21 }
 0x2a1   :  { %v3082_v25 = vpop.f32.mrb[64].mxu0 }
 0x2a2   :  { %v1449_v26 = vadd.f32 %v3082_v25, %v3705_v37  ;;  %v1440_v27 = vpop.f32.mrb[65].mxu0 }
 0x2a3   :  { %v1441_v28 = vadd.f32 %v1440_v27, %v3705_v37  ;;  %v3083_v29 = vpop.f32.mrb[66].mxu0 }
 0x2a4   :  { %v1697_v30 = vmul.f32 0.1, %v1449_v26  ;;  %v1452_v31 = vadd.f32 %v3083_v29, %v3705_v37  ;;  %v1443_v32 = vpop.f32.mrb[67].mxu0 }
 0x2a5   :  { %v1695_v33 = vmul.f32 0.1, %v1441_v28  ;;  %v1444_v34 = vadd.f32 %v1443_v32, %v3705_v37 }
 0x2a6   :  { %v1698_v35 = vmul.f32 0.1, %v1452_v31  ;;  %v1761_v48 = vmax.f32 %v1449_v26, %v1697_v30 }
 0x2a7   :  { %v1696_v36 = vmul.f32 0.1, %v1444_v34  ;;  %v1759_v39 = vmax.f32 %v1441_v28, %v1695_v33 }
 0x2a8   :  { %v1762_v38 = vmax.f32 %v1452_v31, %v1698_v35 }
 0x2a9   :  { %v1760_v40 = vmax.f32 %v1444_v34, %v1696_v36  ;;  %v3086_v41 = vpop.f32.mrb[68].mxu0 }
 0x2aa   :  { %v1824_v42 = vpack.c.bf16 %v1762_v38, %v1761_v48  ;;  %v1465_v43 = vadd.f32 %v3086_v41, %v3705_v37  ;;  %v1456_v44 = vpop.f32.mrb[69].mxu0 }
 0x2ab   :  { %v1457_v46 = vadd.f32 %v1456_v44, %v3705_v37  ;;  %v3087_v49 = vpop.f32.mrb[70].mxu0  ;;  %v1823_v50 = vpack.c.bf16 %v1760_v40, %v1759_v39 }
 0x2ac   :  { %v1701_v47 = vmul.f32 0.1, %v1465_v43  ;;  %v1468_v51 = vadd.f32 %v3087_v49, %v3705_v37  ;;  %v1459_v52 = vpop.f32.mrb[71].mxu0 }
 0x2ad   :  { %v1699_v53 = vmul.f32 0.1, %v1457_v46  ;;  %v1460_v54 = vadd.f32 %v1459_v52, %v3705_v37  ;;  %3160 = vmatprep.mubr.bf16.mxu1 %v1823_v50 }
 0x2ae   :  { %v1702_v55 = vmul.f32 0.1, %v1468_v51  ;;  %3161 = vmatmul.mubr.bf16.vlgmr.msra.gmra.mrb[64].mxu1 %v1824_v42  ;;  %v1765_v57 = vmax.f32 %v1465_v43, %v1701_v47 }
 0x2af   :  { %v1700_v56 = vmul.f32 0.1, %v1460_v54  ;;  %v1763_v59 = vmax.f32 %v1457_v46, %v1699_v53 }
 0x2b0   :  { %v1766_v58 = vmax.f32 %v1468_v51, %v1702_v55 }
 0x2b1   :  { %v1764_v60 = vmax.f32 %v1460_v54, %v1700_v56  ;;  %v3090_v61 = vpop.f32.mrb[72].mxu0 }
 0x2b2   :  { %v1481_v62 = vadd.f32 %v3090_v61, %v3705_v37  ;;  %v1472_v63 = vpop.f32.mrb[73].mxu0  ;;  %v1826_v0 = vpack.c.bf16 %v1766_v58, %v1765_v57 }
 0x2b3   :  { %v1473_v1 = vadd.f32 %v1472_v63, %v3705_v37  ;;  %v3091_v2 = vpop.f32.mrb[74].mxu0  ;;  %v1825_v3 = vpack.c.bf16 %v1764_v60, %v1763_v59 }
 0x2b4   :  { %v1705_v4 = vmul.f32 0.1, %v1481_v62  ;;  %v1484_v5 = vadd.f32 %v3091_v2, %v3705_v37  ;;  %v1475_v6 = vpop.f32.mrb[75].mxu0 }
 0x2b5   :  { %v1703_v7 = vmul.f32 0.1, %v1473_v1  ;;  %v1476_v8 = vadd.f32 %v1475_v6, %v3705_v37  ;;  %3164 = vmatprep.mubr.bf16.mxu1 %v1825_v3 }
 0x2b6   :  { %v1706_v9 = vmul.f32 0.1, %v1484_v5  ;;  %3165 = vmatmul.mubr.bf16.gmra.mrb[68].mxu1 %v1826_v0  ;;  %v1769_v11 = vmax.f32 %v1481_v62, %v1705_v4 }
 0x2b7   :  { %v1704_v10 = vmul.f32 0.1, %v1476_v8  ;;  %v1767_v13 = vmax.f32 %v1473_v1, %v1703_v7 }
 0x2b8   :  { %v1770_v12 = vmax.f32 %v1484_v5, %v1706_v9 }
 0x2b9   :  { %v1768_v14 = vmax.f32 %v1476_v8, %v1704_v10  ;;  %v3094_v15 = vpop.f32.mrb[76].mxu0 }
 0x2ba   :  { %v1497_v16 = vadd.f32 %v3094_v15, %v3705_v37  ;;  %v1488_v17 = vpop.f32.mrb[77].mxu0  ;;  %v1828_v18 = vpack.c.bf16 %v1770_v12, %v1769_v11 }
 0x2bb   :  { %v1489_v19 = vadd.f32 %v1488_v17, %v3705_v37  ;;  %v3095_v20 = vpop.f32.mrb[78].mxu0  ;;  %v1827_v21 = vpack.c.bf16 %v1768_v14, %v1767_v13 }
 0x2bc   :  { %v1709_v22 = vmul.f32 0.1, %v1497_v16  ;;  %v1500_v23 = vadd.f32 %v3095_v20, %v3705_v37  ;;  %v1491_v25 = vpop.f32.mrb[79].mxu0 }
 0x2bd   :  { %v1707_v26 = vmul.f32 0.1, %v1489_v19  ;;  %v1492_v27 = vadd.f32 %v1491_v25, %v3705_v37  ;;  %3168 = vmatprep.mubr.bf16.mxu1 %v1827_v21 }
 0x2be   :  { %v1710_v28 = vmul.f32 0.1, %v1500_v23  ;;  %3169 = vmatmul.mubr.bf16.gmra.mrb[72].mxu1 %v1828_v18  ;;  %v1773_v30 = vmax.f32 %v1497_v16, %v1709_v22 }
 0x2bf   :  { %v1708_v29 = vmul.f32 0.1, %v1492_v27  ;;  %v1771_v32 = vmax.f32 %v1489_v19, %v1707_v26 }
 0x2c0   :  { %v1774_v31 = vmax.f32 %v1500_v23, %v1710_v28 }
 0x2c1   :  { %v1772_v33 = vmax.f32 %v1492_v27, %v1708_v29  ;;  %v3098_v34 = vpop.f32.mrb[80].mxu0 }
 0x2c2   :  { %v1513_v35 = vadd.f32 %v3098_v34, %v3705_v37  ;;  %v1504_v36 = vpop.f32.mrb[81].mxu0  ;;  %v1830_v48 = vpack.c.bf16 %v1774_v31, %v1773_v30 }
 0x2c3   :  { %v1505_v38 = vadd.f32 %v1504_v36, %v3705_v37  ;;  %v3099_v39 = vpop.f32.mrb[82].mxu0  ;;  %v1829_v40 = vpack.c.bf16 %v1772_v33, %v1771_v32 }
 0x2c4   :  { %v1713_v41 = vmul.f32 0.1, %v1513_v35  ;;  %v1516_v42 = vadd.f32 %v3099_v39, %v3705_v37  ;;  %v1507_v43 = vpop.f32.mrb[83].mxu0 }
 0x2c5   :  { %v1711_v44 = vmul.f32 0.1, %v1505_v38  ;;  %v1508_v46 = vadd.f32 %v1507_v43, %v3705_v37  ;;  %3172 = vmatprep.mubr.bf16.mxu1 %v1829_v40 }
 0x2c6   :  { %v1714_v49 = vmul.f32 0.1, %v1516_v42  ;;  %3173 = vmatmul.mubr.bf16.gmra.mrb[76].mxu1 %v1830_v48  ;;  %v1777_v47 = vmax.f32 %v1513_v35, %v1713_v41 }
 0x2c7   :  { %v1712_v50 = vmul.f32 0.1, %v1508_v46  ;;  %v1775_v52 = vmax.f32 %v1505_v38, %v1711_v44 }
 0x2c8   :  { %v1778_v51 = vmax.f32 %v1516_v42, %v1714_v49 }
 0x2c9   :  { %v1776_v53 = vmax.f32 %v1508_v46, %v1712_v50  ;;  %v3102_v54 = vpop.f32.mrb[84].mxu0 }
 0x2ca   :  { %v1529_v55 = vadd.f32 %v3102_v54, %v3705_v37  ;;  %v1520_v56 = vpop.f32.mrb[85].mxu0  ;;  %v1832_v57 = vpack.c.bf16 %v1778_v51, %v1777_v47 }
 0x2cb   :  { %v1521_v58 = vadd.f32 %v1520_v56, %v3705_v37  ;;  %v3103_v59 = vpop.f32.mrb[86].mxu0  ;;  %v1831_v60 = vpack.c.bf16 %v1776_v53, %v1775_v52 }
 0x2cc   :  { %v1717_v61 = vmul.f32 0.1, %v1529_v55  ;;  %v1532_v62 = vadd.f32 %v3103_v59, %v3705_v37  ;;  %v1523_v63 = vpop.f32.mrb[87].mxu0 }
 0x2cd   :  { %v1715_v0 = vmul.f32 0.1, %v1521_v58  ;;  %v1524_v1 = vadd.f32 %v1523_v63, %v3705_v37  ;;  %3176 = vmatprep.mubr.bf16.mxu1 %v1831_v60 }
 0x2ce   :  { %v1718_v2 = vmul.f32 0.1, %v1532_v62  ;;  %3177 = vmatmul.mubr.bf16.gmra.mrb[80].mxu1 %v1832_v57  ;;  %v1781_v4 = vmax.f32 %v1529_v55, %v1717_v61 }
 0x2cf   :  { %v1716_v3 = vmul.f32 0.1, %v1524_v1  ;;  %v1779_v6 = vmax.f32 %v1521_v58, %v1715_v0 }
 0x2d0   :  { %v1782_v5 = vmax.f32 %v1532_v62, %v1718_v2 }
 0x2d1   :  { %v1780_v7 = vmax.f32 %v1524_v1, %v1716_v3  ;;  %v3106_v8 = vpop.f32.mrb[88].mxu0 }
 0x2d2   :  { %v1545_v9 = vadd.f32 %v3106_v8, %v3705_v37  ;;  %v1536_v10 = vpop.f32.mrb[89].mxu0  ;;  %v1834_v11 = vpack.c.bf16 %v1782_v5, %v1781_v4 }
 0x2d3   :  { %v1537_v12 = vadd.f32 %v1536_v10, %v3705_v37  ;;  %v3107_v13 = vpop.f32.mrb[90].mxu0  ;;  %v1833_v14 = vpack.c.bf16 %v1780_v7, %v1779_v6 }
 0x2d4   :  { %v1721_v15 = vmul.f32 0.1, %v1545_v9  ;;  %v1548_v16 = vadd.f32 %v3107_v13, %v3705_v37  ;;  %v1539_v17 = vpop.f32.mrb[91].mxu0 }
 0x2d5   :  { %v1719_v18 = vmul.f32 0.1, %v1537_v12  ;;  %v1540_v19 = vadd.f32 %v1539_v17, %v3705_v37  ;;  %3180 = vmatprep.mubr.bf16.mxu1 %v1833_v14 }
 0x2d6   :  { %v1722_v20 = vmul.f32 0.1, %v1548_v16  ;;  %3181 = vmatmul.mubr.bf16.gmra.mrb[84].mxu1 %v1834_v11  ;;  %v1785_v22 = vmax.f32 %v1545_v9, %v1721_v15 }
 0x2d7   :  { %v1720_v21 = vmul.f32 0.1, %v1540_v19  ;;  %v1783_v25 = vmax.f32 %v1537_v12, %v1719_v18 }
 0x2d8   :  { %v1786_v23 = vmax.f32 %v1548_v16, %v1722_v20 }
 0x2d9   :  { %v1784_v26 = vmax.f32 %v1540_v19, %v1720_v21  ;;  %v3110_v27 = vpop.f32.mrb[92].mxu0 }
 0x2da   :  { %v1561_v28 = vadd.f32 %v3110_v27, %v3705_v37  ;;  %v1552_v29 = vpop.f32.mrb[93].mxu0  ;;  %v1836_v30 = vpack.c.bf16 %v1786_v23, %v1785_v22 }
 0x2db   :  { %v1553_v31 = vadd.f32 %v1552_v29, %v3705_v37  ;;  %v3111_v32 = vpop.f32.mrb[94].mxu0  ;;  %v1835_v33 = vpack.c.bf16 %v1784_v26, %v1783_v25 }
 0x2dc   :  { %v1725_v34 = vmul.f32 0.1, %v1561_v28  ;;  %v1564_v35 = vadd.f32 %v3111_v32, %v3705_v37  ;;  %v1555_v36 = vpop.f32.mrb[95].mxu0 }
 0x2dd   :  { %v1723_v48 = vmul.f32 0.1, %v1553_v31  ;;  %v1556_v38 = vadd.f32 %v1555_v36, %v3705_v37  ;;  %3184 = vmatprep.mubr.bf16.mxu1 %v1835_v33 }
 0x2de   :  { %v1726_v39 = vmul.f32 0.1, %v1564_v35  ;;  %3185 = vmatmul.mubr.bf16.gmra.mrb[88].mxu1 %v1836_v30  ;;  %v1789_v41 = vmax.f32 %v1561_v28, %v1725_v34 }
 0x2df   :  { %v1724_v40 = vmul.f32 0.1, %v1556_v38  ;;  %v1787_v43 = vmax.f32 %v1553_v31, %v1723_v48 }
 0x2e0   :  { %v1790_v42 = vmax.f32 %v1564_v35, %v1726_v39 }
 0x2e1   :  { %v1788_v44 = vmax.f32 %v1556_v38, %v1724_v40  ;;  %v3114_v46 = vpop.f32.mrb[96].mxu0 }
 0x2e2   :  { %v1577_v49 = vadd.f32 %v3114_v46, %v3705_v37  ;;  %v1568_v50 = vpop.f32.mrb[97].mxu0  ;;  %v1838_v47 = vpack.c.bf16 %v1790_v42, %v1789_v41 }
 0x2e3   :  { %v1569_v51 = vadd.f32 %v1568_v50, %v3705_v37  ;;  %v3115_v52 = vpop.f32.mrb[98].mxu0  ;;  %v1837_v53 = vpack.c.bf16 %v1788_v44, %v1787_v43 }
 0x2e4   :  { %v1729_v54 = vmul.f32 0.1, %v1577_v49  ;;  %v1580_v55 = vadd.f32 %v3115_v52, %v3705_v37  ;;  %v1571_v56 = vpop.f32.mrb[99].mxu0 }
 0x2e5   :  { %v1727_v57 = vmul.f32 0.1, %v1569_v51  ;;  %v1572_v58 = vadd.f32 %v1571_v56, %v3705_v37  ;;  %3188 = vmatprep.mubr.bf16.mxu1 %v1837_v53 }
 0x2e6   :  { %v1730_v59 = vmul.f32 0.1, %v1580_v55  ;;  %3189 = vmatmul.mubr.bf16.gmra.mrb[92].mxu1 %v1838_v47  ;;  %v1793_v61 = vmax.f32 %v1577_v49, %v1729_v54 }
 0x2e7   :  { %v1728_v60 = vmul.f32 0.1, %v1572_v58  ;;  %v1791_v63 = vmax.f32 %v1569_v51, %v1727_v57 }
 0x2e8   :  { %v1794_v62 = vmax.f32 %v1580_v55, %v1730_v59 }
 0x2e9   :  { %v1792_v0 = vmax.f32 %v1572_v58, %v1728_v60  ;;  %v3118_v1 = vpop.f32.mrb[100].mxu0 }
 0x2ea   :  { %v1593_v2 = vadd.f32 %v3118_v1, %v3705_v37  ;;  %v1584_v3 = vpop.f32.mrb[101].mxu0  ;;  %v1840_v4 = vpack.c.bf16 %v1794_v62, %v1793_v61 }
 0x2eb   :  { %v1585_v5 = vadd.f32 %v1584_v3, %v3705_v37  ;;  %v3119_v6 = vpop.f32.mrb[102].mxu0  ;;  %v1839_v7 = vpack.c.bf16 %v1792_v0, %v1791_v63 }
 0x2ec   :  { %v1733_v8 = vmul.f32 0.1, %v1593_v2  ;;  %v1596_v9 = vadd.f32 %v3119_v6, %v3705_v37  ;;  %v1587_v10 = vpop.f32.mrb[103].mxu0 }
 0x2ed   :  { %v1731_v11 = vmul.f32 0.1, %v1585_v5  ;;  %v1588_v12 = vadd.f32 %v1587_v10, %v3705_v37  ;;  %3192 = vmatprep.mubr.bf16.mxu1 %v1839_v7 }
 0x2ee   :  { %v1734_v13 = vmul.f32 0.1, %v1596_v9  ;;  %3193 = vmatmul.mubr.bf16.gmra.mrb[96].mxu1 %v1840_v4  ;;  %v1797_v15 = vmax.f32 %v1593_v2, %v1733_v8 }
 0x2ef   :  { %v1732_v14 = vmul.f32 0.1, %v1588_v12  ;;  %v1795_v17 = vmax.f32 %v1585_v5, %v1731_v11 }
 0x2f0   :  { %v1798_v16 = vmax.f32 %v1596_v9, %v1734_v13 }
 0x2f1   :  { %v1796_v18 = vmax.f32 %v1588_v12, %v1732_v14  ;;  %v3122_v19 = vpop.f32.mrb[104].mxu0 }
 0x2f2   :  { %v1609_v20 = vadd.f32 %v3122_v19, %v3705_v37  ;;  %v1600_v21 = vpop.f32.mrb[105].mxu0  ;;  %v1842_v22 = vpack.c.bf16 %v1798_v16, %v1797_v15 }
 0x2f3   :  { %v1601_v23 = vadd.f32 %v1600_v21, %v3705_v37  ;;  %v3123_v25 = vpop.f32.mrb[106].mxu0  ;;  %v1841_v26 = vpack.c.bf16 %v1796_v18, %v1795_v17 }
 0x2f4   :  { %v1737_v27 = vmul.f32 0.1, %v1609_v20  ;;  %v1612_v28 = vadd.f32 %v3123_v25, %v3705_v37  ;;  %v1603_v29 = vpop.f32.mrb[107].mxu0 }
 0x2f5   :  { %v1735_v30 = vmul.f32 0.1, %v1601_v23  ;;  %v1604_v31 = vadd.f32 %v1603_v29, %v3705_v37  ;;  %3196 = vmatprep.mubr.bf16.mxu1 %v1841_v26 }
 0x2f6   :  { %v1738_v32 = vmul.f32 0.1, %v1612_v28  ;;  %3197 = vmatmul.mubr.bf16.gmra.mrb[100].mxu1 %v1842_v22  ;;  %v1801_v34 = vmax.f32 %v1609_v20, %v1737_v27 }
 0x2f7   :  { %v1736_v33 = vmul.f32 0.1, %v1604_v31  ;;  %v1799_v36 = vmax.f32 %v1601_v23, %v1735_v30 }
 0x2f8   :  { %v1802_v35 = vmax.f32 %v1612_v28, %v1738_v32 }
 0x2f9   :  { %v1800_v48 = vmax.f32 %v1604_v31, %v1736_v33  ;;  %v3126_v38 = vpop.f32.mrb[108].mxu0 }
 0x2fa   :  { %v1625_v39 = vadd.f32 %v3126_v38, %v3705_v37  ;;  %v1616_v40 = vpop.f32.mrb[109].mxu0  ;;  %v1844_v41 = vpack.c.bf16 %v1802_v35, %v1801_v34 }
 0x2fb   :  { %v1617_v42 = vadd.f32 %v1616_v40, %v3705_v37  ;;  %v3127_v43 = vpop.f32.mrb[110].mxu0  ;;  %v1843_v44 = vpack.c.bf16 %v1800_v48, %v1799_v36 }
 0x2fc   :  { %v1741_v46 = vmul.f32 0.1, %v1625_v39  ;;  %v1628_v49 = vadd.f32 %v3127_v43, %v3705_v37  ;;  %v1619_v50 = vpop.f32.mrb[111].mxu0 }
 0x2fd   :  { %v1739_v47 = vmul.f32 0.1, %v1617_v42  ;;  %v1620_v51 = vadd.f32 %v1619_v50, %v3705_v37  ;;  %3200 = vmatprep.mubr.bf16.mxu1 %v1843_v44 }
 0x2fe   :  { %v1742_v52 = vmul.f32 0.1, %v1628_v49  ;;  %3201 = vmatmul.mubr.bf16.gmra.mrb[104].mxu1 %v1844_v41  ;;  %v1805_v54 = vmax.f32 %v1625_v39, %v1741_v46 }
 0x2ff   :  { %v1740_v53 = vmul.f32 0.1, %v1620_v51  ;;  %v1803_v56 = vmax.f32 %v1617_v42, %v1739_v47 }
 0x300   :  { %v1806_v55 = vmax.f32 %v1628_v49, %v1742_v52 }
 0x301   :  { %v1804_v57 = vmax.f32 %v1620_v51, %v1740_v53  ;;  %v3130_v58 = vpop.f32.mrb[112].mxu0 }
 0x302   :  { %v1641_v59 = vadd.f32 %v3130_v58, %v3705_v37  ;;  %v1632_v60 = vpop.f32.mrb[113].mxu0  ;;  %v1846_v61 = vpack.c.bf16 %v1806_v55, %v1805_v54 }
 0x303   :  { %v1633_v62 = vadd.f32 %v1632_v60, %v3705_v37  ;;  %v3131_v63 = vpop.f32.mrb[114].mxu0  ;;  %v1845_v0 = vpack.c.bf16 %v1804_v57, %v1803_v56 }
 0x304   :  { %v1745_v1 = vmul.f32 0.1, %v1641_v59  ;;  %v1644_v2 = vadd.f32 %v3131_v63, %v3705_v37  ;;  %v1635_v3 = vpop.f32.mrb[115].mxu0 }
 0x305   :  { %v1743_v4 = vmul.f32 0.1, %v1633_v62  ;;  %v1636_v5 = vadd.f32 %v1635_v3, %v3705_v37  ;;  %3204 = vmatprep.mubr.bf16.mxu1 %v1845_v0 }
 0x306   :  { %v1746_v6 = vmul.f32 0.1, %v1644_v2  ;;  %3205 = vmatmul.mubr.bf16.gmra.mrb[108].mxu1 %v1846_v61  ;;  %v1809_v8 = vmax.f32 %v1641_v59, %v1745_v1 }
 0x307   :  { %v1744_v7 = vmul.f32 0.1, %v1636_v5  ;;  %v1807_v10 = vmax.f32 %v1633_v62, %v1743_v4 }
 0x308   :  { %v1810_v9 = vmax.f32 %v1644_v2, %v1746_v6 }
 0x309   :  { %v1808_v11 = vmax.f32 %v1636_v5, %v1744_v7  ;;  %v3134_v12 = vpop.f32.mrb[116].mxu0  ;;  %v3314_v7 = vmov 0.0  }
 0x30a   :  { %v1657_v13 = vadd.f32 %v3134_v12, %v3705_v37  ;;  %v1648_v14 = vpop.f32.mrb[117].mxu0  ;;  %v1848_v15 = vpack.c.bf16 %v1810_v9, %v1809_v8  ;;  %3224 = vmatprep.subr.bf16.mxu0 %v3314_v7  ;;  %v3305_v8 = vld [vmem:[%s3880_s2 + $0xc0] sm:$0xff]   ;;  %v3307_v9 = vld [vmem:[%s3880_s2 + $0xd0] sm:$0xff]   ;;  %v1874_v12 = vsub.s32 3, %v3510_v45  ;;  %v3310_v45 = vld [vmem:[%s3880_s2 + $0xe8] sm:$0xff]   ;;  %3240 = vmatprep.mubr.msk.bf16.mxu0 %vm3315_vm1, %v3314_v7 }
 0x30b   :  { %v1649_v16 = vadd.f32 %v1648_v14, %v3705_v37  ;;  %v3135_v17 = vpop.f32.mrb[118].mxu0  ;;  %v1847_v18 = vpack.c.bf16 %v1808_v11, %v1807_v10  ;;  %3225 = vmatpush3.bf16.msra.mxu0 %v3305_v8  ;;  %v3308_v10 = vld [vmem:[%s3880_s2 + $0xd8] sm:$0xff]   ;;  %v3309_v11 = vld [vmem:[%s3880_s2 + $0xe0] sm:$0xff]  }
 0x30c   :  { %v1749_v19 = vmul.f32 0.1, %v1657_v13  ;;  %v1660_v20 = vadd.f32 %v3135_v17, %v3705_v37  ;;  %v1651_v21 = vpop.f32.mrb[119].mxu0  ;;  %3226 = vmatprep.subr.bf16.mxu0 %v3314_v7 }
 0x30d   :  { %v1747_v22 = vmul.f32 0.1, %v1649_v16  ;;  %v1652_v23 = vadd.f32 %v1651_v21, %v3705_v37  ;;  %3208 = vmatprep.mubr.bf16.mxu1 %v1847_v18 }
 0x30e   :  { %v1750_v25 = vmul.f32 0.1, %v1660_v20  ;;  %3209 = vmatmul.mubr.bf16.gmra.mrb[112].mxu1 %v1848_v15  ;;  %v1813_v27 = vmax.f32 %v1657_v13, %v1749_v19  ;;  %v3794_v13 = vrot.slane %v3702_v24, %v1874_v12 }
 0x30f   :  { %v1748_v26 = vmul.f32 0.1, %v1652_v23  ;;  %v1811_v29 = vmax.f32 %v1649_v16, %v1747_v22 }
 0x310   :  { %v1814_v28 = vmax.f32 %v1660_v20, %v1750_v25 }
 0x311   :  { %v1812_v30 = vmax.f32 %v1652_v23, %v1748_v26  ;;  %v3138_v31 = vpop.f32.mrb[120].mxu0 }
 0x312   :  { %v1673_v32 = vadd.f32 %v3138_v31, %v3705_v37  ;;  %v1664_v33 = vpop.f32.mrb[121].mxu0  ;;  %v1850_v34 = vpack.c.bf16 %v1814_v28, %v1813_v27 }
 0x313   :  { %v1665_v35 = vadd.f32 %v1664_v33, %v3705_v37  ;;  %v3139_v36 = vpop.f32.mrb[122].mxu0  ;;  %v1849_v48 = vpack.c.bf16 %v1812_v30, %v1811_v29 }
 0x314   :  { %v1753_v38 = vmul.f32 0.1, %v1673_v32  ;;  %v1676_v39 = vadd.f32 %v3139_v36, %v3705_v37  ;;  %v1667_v40 = vpop.f32.mrb[123].mxu0 }
 0x315   :  { %v1751_v41 = vmul.f32 0.1, %v1665_v35  ;;  %v1668_v42 = vadd.f32 %v1667_v40, %v3705_v37  ;;  %3212 = vmatprep.mubr.bf16.mxu1 %v1849_v48 }
 0x316   :  { %v1754_v43 = vmul.f32 0.1, %v1676_v39  ;;  %3213 = vmatmul.mubr.bf16.gmra.mrb[116].mxu1 %v1850_v34  ;;  %v1817_v46 = vmax.f32 %v1673_v32, %v1753_v38 }
 0x317   :  { %v1752_v44 = vmul.f32 0.1, %v1668_v42  ;;  %v1815_v50 = vmax.f32 %v1665_v35, %v1751_v41 }
 0x318   :  { %v1818_v49 = vmax.f32 %v1676_v39, %v1754_v43 }
 0x319   :  { %v1816_v47 = vmax.f32 %v1668_v42, %v1752_v44  ;;  %v3142_v51 = vpop.f32.mrb[124].mxu0 }
 0x31a   :  { %v1689_v52 = vadd.f32 %v3142_v51, %v3705_v37  ;;  %v1680_v53 = vpop.f32.mrb[125].mxu0  ;;  %v1852_v54 = vpack.c.bf16 %v1818_v49, %v1817_v46 }
 0x31b   :  { %v1681_v55 = vadd.f32 %v1680_v53, %v3705_v37  ;;  %v3143_v56 = vpop.f32.mrb[126].mxu0  ;;  %v1851_v57 = vpack.c.bf16 %v1816_v47, %v1815_v50 }
 0x31c   :  { %v1757_v58 = vmul.f32 0.1, %v1689_v52  ;;  %v1692_v59 = vadd.f32 %v3143_v56, %v3705_v37  ;;  %v1683_v60 = vpop.f32.mrb[127].mxu0 }
 0x31d   :  { %v1755_v61 = vmul.f32 0.1, %v1681_v55  ;;  %v1684_v62 = vadd.f32 %v1683_v60, %v3705_v37  ;;  %3216 = vmatprep.mubr.bf16.mxu1 %v1851_v57  ;;  %v3306_v37 = vld [vmem:[%s3880_s2 + $0xc8] sm:$0xff]   ;;  %v3311_v57 = vld [vmem:[%s3880_s2 + $0xf0] sm:$0xff]  }
 0x31e   :  { %v1758_v63 = vmul.f32 0.1, %v1692_v59  ;;  %3217 = vmatmul.mubr.bf16.gmra.mrb[120].mxu1 %v1852_v54  ;;  %v1821_v1 = vmax.f32 %v1689_v52, %v1757_v58  ;;  %3227 = vmatpush3.bf16.msra.mxu0 %v3306_v37 }
 0x31f   :  { %v1756_v0 = vmul.f32 0.1, %v1684_v62  ;;  %v1819_v3 = vmax.f32 %v1681_v55, %v1755_v61  ;;  %3228 = vmatprep.subr.bf16.mxu0 %v3314_v7 }
 0x320   :  { %v1822_v2 = vmax.f32 %v1692_v59, %v1758_v63 }
 0x321   :  { %v1820_v4 = vmax.f32 %v1684_v62, %v1756_v0 }
 0x322   :  { %v1854_v5 = vpack.c.bf16 %v1822_v2, %v1821_v1  ;;  %3229 = vmatpush3.bf16.msra.mxu0 %v3307_v9 }
 0x323   :  { %v1853_v6 = vpack.c.bf16 %v1820_v4, %v1819_v3  ;;  %3230 = vmatprep.subr.bf16.mxu0 %v3314_v7  ;;  %v3312_v3 = vld [vmem:[%s3880_s2 + $0xf8] sm:$0xff]  }
 0x325   :  { %3220 = vmatprep.mubr.bf16.mxu1 %v1853_v6 }
 0x326   :  { %3221 = vmatmul.mubr.bf16.gmra.mrb[124].mxu1 %v1854_v5  ;;  %3231 = vmatpush3.bf16.msra.mxu0 %v3308_v10 }
 0x327   :  { %3232 = vmatprep.subr.bf16.mxu0 %v3314_v7 }
 0x32a   :  { %3233 = vmatpush3.bf16.msra.mxu0 %v3309_v11 }
 0x32b   :  { %3234 = vmatprep.subr.bf16.mxu0 %v3314_v7 }
 0x32e   :  { %3235 = vmatpush3.bf16.msra.mxu0 %v3310_v45 }
 0x32f   :  { %3236 = vmatprep.subr.bf16.mxu0 %v3314_v7 }
 0x332   :  { %3237 = vmatpush3.bf16.msra.mxu0 %v3311_v57 }
 0x333   :  { %3238 = vmatprep.subr.bf16.mxu0 %v3314_v7 }
 0x336   :  { %3239 = vmatpush3.bf16.msra.mxu0 %v3312_v3 }
 0x381   :  { %v3162_v14 = vpop.f32.mrb[64].mxu1 }
 0x382   :  { %v1958_v15 = vpop.f32.mrb[65].mxu1  ;;  %v1967_v16 = vadd.f32 %v3162_v14, %v3794_v13 }
 0x383   :  { %v1959_v17 = vadd.f32 %v1958_v15, %v3794_v13  ;;  %v3163_v18 = vpop.f32.mrb[66].mxu1 }
 0x384   :  { %v1970_v19 = vadd.f32 %v3163_v18, %v3794_v13  ;;  %v1961_v20 = vpop.f32.mrb[67].mxu1  ;;  %v2215_v23 = vmul.f32 0.1, %v1967_v16 }
 0x385   :  { %v2213_v21 = vmul.f32 0.1, %v1959_v17  ;;  %v1962_v22 = vadd.f32 %v1961_v20, %v3794_v13 }
 0x386   :  { %v2216_v24 = vmul.f32 0.1, %v1970_v19  ;;  %v2279_v30 = vmax.f32 %v1967_v16, %v2215_v23 }
 0x387   :  { %v2214_v25 = vmul.f32 0.1, %v1962_v22  ;;  %v2277_v26 = vmax.f32 %v1959_v17, %v2213_v21 }
 0x388   :  { %v2280_v35 = vmax.f32 %v1970_v19, %v2216_v24 }
 0x389   :  { %v2278_v27 = vmax.f32 %v1962_v22, %v2214_v25  ;;  %v3166_v28 = vpop.f32.mrb[68].mxu1 }
 0x38a   :  { %v1974_v29 = vpop.f32.mrb[69].mxu1  ;;  %v1983_v32 = vadd.f32 %v3166_v28, %v3794_v13 }
 0x38b   :  { %v2341_v31 = vadd.f32 %v2278_v27, %v2277_v26  ;;  %v1975_v33 = vadd.f32 %v1974_v29, %v3794_v13  ;;  %v3167_v34 = vpop.f32.mrb[70].mxu1 }
 0x38c   :  { %v1977_v36 = vpop.f32.mrb[71].mxu1  ;;  %v1986_v39 = vadd.f32 %v3167_v34, %v3794_v13  ;;  %v2219_v41 = vmul.f32 0.1, %v1983_v32 }
 0x38d   :  { %v2342_v48 = vadd.f32 %v2341_v31, %v2279_v30  ;;  %v2217_v38 = vmul.f32 0.1, %v1975_v33  ;;  %v1978_v40 = vadd.f32 %v1977_v36, %v3794_v13 }
 0x38e   :  { %v2220_v49 = vmul.f32 0.1, %v1986_v39  ;;  %v2283_v52 = vmax.f32 %v1983_v32, %v2219_v41 }
 0x38f   :  { %v2281_v42 = vmax.f32 %v1975_v33, %v2217_v38  ;;  %v2343_v43 = vadd.f32 %v2342_v48, %v2280_v35  ;;  %v2218_v44 = vmul.f32 0.1, %v1978_v40 }
 0x390   :  { %v2284_v60 = vmax.f32 %v1986_v39, %v2220_v49 }
 0x391   :  { %v2344_v46 = vadd.f32 %v2343_v43, %v2281_v42  ;;  %v2282_v50 = vmax.f32 %v1978_v40, %v2218_v44  ;;  %v3170_v47 = vpop.f32.mrb[72].mxu1 }
 0x392   :  { %v1990_v51 = vpop.f32.mrb[73].mxu1  ;;  %v1999_v54 = vadd.f32 %v3170_v47, %v3794_v13 }
 0x393   :  { %v2345_v53 = vadd.f32 %v2344_v46, %v2282_v50  ;;  %v1991_v55 = vadd.f32 %v1990_v51, %v3794_v13  ;;  %v3171_v56 = vpop.f32.mrb[74].mxu1 }
 0x394   :  { %v2002_v58 = vadd.f32 %v3171_v56, %v3794_v13  ;;  %v1993_v59 = vpop.f32.mrb[75].mxu1  ;;  %v2223_v1 = vmul.f32 0.1, %v1999_v54 }
 0x395   :  { %v2346_v61 = vadd.f32 %v2345_v53, %v2283_v52  ;;  %v2221_v62 = vmul.f32 0.1, %v1991_v55  ;;  %v1994_v63 = vadd.f32 %v1993_v59, %v3794_v13 }
 0x396   :  { %v2224_v4 = vmul.f32 0.1, %v2002_v58  ;;  %v2287_v10 = vmax.f32 %v1999_v54, %v2223_v1 }
 0x397   :  { %v2347_v0 = vadd.f32 %v2346_v61, %v2284_v60  ;;  %v2222_v2 = vmul.f32 0.1, %v1994_v63  ;;  %v2285_v5 = vmax.f32 %v1991_v55, %v2221_v62 }
 0x398   :  { %v2288_v16 = vmax.f32 %v2002_v58, %v2224_v4 }
 0x399   :  { %v2286_v6 = vmax.f32 %v1994_v63, %v2222_v2  ;;  %v3174_v8 = vpop.f32.mrb[76].mxu1  ;;  %v2348_v37 = vrot.slane %v2347_v0, 4 }
 0x39a   :  { %v2006_v9 = vpop.f32.mrb[77].mxu1  ;;  %v2015_v12 = vadd.f32 %v3174_v8, %v3794_v13 }
 0x39b   :  { %v2354_v11 = vadd.f32 %v2286_v6, %v2285_v5  ;;  %v2007_v14 = vadd.f32 %v2006_v9, %v3794_v13  ;;  %v3175_v15 = vpop.f32.mrb[78].mxu1  ;;  %v2349_v21 = vadd.f32 %v2348_v37, %v2347_v0 }
 0x39c   :  { %v2009_v17 = vpop.f32.mrb[79].mxu1  ;;  %v2018_v20 = vadd.f32 %v3175_v15, %v3794_v13  ;;  %v2227_v22 = vmul.f32 0.1, %v2015_v12 }
 0x39d   :  { %v2355_v18 = vadd.f32 %v2354_v11, %v2287_v10  ;;  %v2225_v19 = vmul.f32 0.1, %v2007_v14  ;;  %v2010_v7 = vadd.f32 %v2009_v17, %v3794_v13  ;;  %v2350_v29 = vrot.slane %v2349_v21, 2 }
 0x39e   :  { %v2228_v26 = vmul.f32 0.1, %v2018_v20  ;;  %v2291_v31 = vmax.f32 %v2015_v12, %v2227_v22 }
 0x39f   :  { %v2289_v23 = vmax.f32 %v2007_v14, %v2225_v19  ;;  %v2356_v25 = vadd.f32 %v2355_v18, %v2288_v16  ;;  %v2226_v45 = vmul.f32 0.1, %v2010_v7  ;;  %v2351_v42 = vadd.f32 %v2350_v29, %v2349_v21 }
 0x3a0   :  { %v2292_v38 = vmax.f32 %v2018_v20, %v2228_v26 }
 0x3a1   :  { %v2357_v24 = vadd.f32 %v2356_v25, %v2289_v23  ;;  %v2290_v27 = vmax.f32 %v2010_v7, %v2226_v45  ;;  %v3178_v28 = vpop.f32.mrb[80].mxu1  ;;  %v2352_v53 = vrot.slane %v2351_v42, 1 }
 0x3a2   :  { %v2022_v30 = vpop.f32.mrb[81].mxu1  ;;  %v2031_v33 = vadd.f32 %v3178_v28, %v3794_v13 }
 0x3a3   :  { %v2358_v32 = vadd.f32 %v2357_v24, %v2290_v27  ;;  %v2023_v34 = vadd.f32 %v2022_v30, %v3794_v13  ;;  %v3179_v35 = vpop.f32.mrb[82].mxu1  ;;  %v2353_v4 = vadd.f32 %v2352_v53, %v2351_v42 }
 0x3a4   :  { %v2034_v36 = vadd.f32 %v3179_v35, %v3794_v13  ;;  %v2025_v48 = vpop.f32.mrb[83].mxu1  ;;  %v2231_v44 = vmul.f32 0.1, %v2031_v33 }
 0x3a5   :  { %v2359_v39 = vadd.f32 %v2358_v32, %v2291_v31  ;;  %v2229_v40 = vmul.f32 0.1, %v2023_v34  ;;  %v2026_v41 = vadd.f32 %v2025_v48, %v3794_v13  ;;  %v2445_v16 = vpack.c.bf16 %v2353_v4, %v2353_v4 }
 0x3a6   :  { %v2232_v49 = vmul.f32 0.1, %v2034_v36  ;;  %v2295_v57 = vmax.f32 %v2031_v33, %v2231_v44 }
 0x3a7   :  { %v2360_v43 = vadd.f32 %v2359_v39, %v2292_v38  ;;  %v2230_v46 = vmul.f32 0.1, %v2026_v41  ;;  %v2293_v47 = vmax.f32 %v2023_v34, %v2229_v40  ;;  %v2485_v29 = vunpack.c.l.b16 %v2445_v16 }
 0x3a8   :  { %v2296_v61 = vmax.f32 %v2034_v36, %v2232_v49 }
 0x3a9   :  { %v2361_v50 = vrot.slane %v2360_v43, 4  ;;  %v2294_v51 = vmax.f32 %v2026_v41, %v2230_v46  ;;  %v3182_v52 = vpop.f32.mrb[84].mxu1 }
 0x3aa   :  { %v2047_v54 = vadd.f32 %v3182_v52, %v3794_v13  ;;  %v2038_v55 = vpop.f32.mrb[85].mxu1 }
 0x3ab   :  { %v2362_v56 = vadd.f32 %v2361_v50, %v2360_v43  ;;  %v2367_v58 = vadd.f32 %v2294_v51, %v2293_v47  ;;  %v2039_v59 = vadd.f32 %v2038_v55, %v3794_v13  ;;  %v3183_v60 = vpop.f32.mrb[86].mxu1 }
 0x3ac   :  { %v2050_v62 = vadd.f32 %v3183_v60, %v3794_v13  ;;  %v2041_v63 = vpop.f32.mrb[87].mxu1  ;;  %v2235_v5 = vmul.f32 0.1, %v2047_v54 }
 0x3ad   :  { %v2363_v0 = vrot.slane %v2362_v56, 2  ;;  %v2368_v1 = vadd.f32 %v2367_v58, %v2295_v57  ;;  %v2233_v2 = vmul.f32 0.1, %v2039_v59  ;;  %v2042_v3 = vadd.f32 %v2041_v63, %v3794_v13 }
 0x3ae   :  { %v2236_v10 = vmul.f32 0.1, %v2050_v62  ;;  %v2299_v17 = vmax.f32 %v2047_v54, %v2235_v5 }
 0x3af   :  { %v2364_v6 = vadd.f32 %v2363_v0, %v2362_v56  ;;  %v2297_v8 = vmax.f32 %v2039_v59, %v2233_v2  ;;  %v2369_v37 = vadd.f32 %v2368_v1, %v2296_v61  ;;  %v2234_v9 = vmul.f32 0.1, %v2042_v3 }
 0x3b0   :  { %v2300_v23 = vmax.f32 %v2050_v62, %v2236_v10 }
 0x3b1   :  { %v2365_v11 = vrot.slane %v2364_v6, 1  ;;  %v2370_v12 = vadd.f32 %v2369_v37, %v2297_v8  ;;  %v2298_v14 = vmax.f32 %v2042_v3, %v2234_v9  ;;  %v3186_v15 = vpop.f32.mrb[88].mxu1 }
 0x3b2   :  { %v2054_v18 = vpop.f32.mrb[89].mxu1  ;;  %v2063_v7 = vadd.f32 %v3186_v15, %v3794_v13 }
 0x3b3   :  { %v2366_v19 = vadd.f32 %v2365_v11, %v2364_v6  ;;  %v2371_v20 = vadd.f32 %v2370_v12, %v2298_v14  ;;  %v2055_v21 = vadd.f32 %v2054_v18, %v3794_v13  ;;  %v3187_v22 = vpop.f32.mrb[90].mxu1 }
 0x3b4   :  { %v2066_v25 = vadd.f32 %v3187_v22, %v3794_v13  ;;  %v2057_v45 = vpop.f32.mrb[91].mxu1  ;;  %v2239_v32 = vmul.f32 0.1, %v2063_v7 }
 0x3b5   :  { %v2446_v24 = vpack.c.bf16 %v2366_v19, %v2366_v19  ;;  %v2372_v26 = vadd.f32 %v2371_v20, %v2299_v17  ;;  %v2237_v27 = vmul.f32 0.1, %v2055_v21  ;;  %v2058_v28 = vadd.f32 %v2057_v45, %v3794_v13 }
 0x3b6   :  { %v2240_v34 = vmul.f32 0.1, %v2066_v25  ;;  %v2303_v43 = vmax.f32 %v2063_v7, %v2239_v32 }
 0x3b7   :  { %v2486_v30 = vunpack.c.l.b16 %v2446_v24  ;;  %v2373_v31 = vadd.f32 %v2372_v26, %v2300_v23  ;;  %v2238_v33 = vmul.f32 0.1, %v2058_v28  ;;  %v2301_v48 = vmax.f32 %v2055_v21, %v2237_v27 }
 0x3b8   :  { %v2304_v50 = vmax.f32 %v2066_v25, %v2240_v34 }
 0x3b9   :  { %v2494_v35 = vsel %vm2493_vm2, %v2486_v30, %v2485_v29  ;;  %v2374_v36 = vrot.slane %v2373_v31, 4  ;;  %v2302_v38 = vmax.f32 %v2058_v28, %v2238_v33  ;;  %v3190_v39 = vpop.f32.mrb[92].mxu1 }
 0x3ba   :  { %v2079_v40 = vadd.f32 %v3190_v39, %v3794_v13  ;;  %v2070_v41 = vpop.f32.mrb[93].mxu1 }
 0x3bb   :  { %v2375_v42 = vadd.f32 %v2374_v36, %v2373_v31  ;;  %v2380_v44 = vadd.f32 %v2302_v38, %v2301_v48  ;;  %v2071_v46 = vadd.f32 %v2070_v41, %v3794_v13  ;;  %v3191_v49 = vpop.f32.mrb[94].mxu1 }
 0x3bc   :  { %v2082_v47 = vadd.f32 %v3191_v49, %v3794_v13  ;;  %v2073_v51 = vpop.f32.mrb[95].mxu1  ;;  %v2243_v56 = vmul.f32 0.1, %v2079_v40 }
 0x3bd   :  { %v2376_v52 = vrot.slane %v2375_v42, 2  ;;  %v2381_v53 = vadd.f32 %v2380_v44, %v2303_v43  ;;  %v2241_v54 = vmul.f32 0.1, %v2071_v46  ;;  %v2074_v55 = vadd.f32 %v2073_v51, %v3794_v13 }
 0x3be   :  { %v2244_v61 = vmul.f32 0.1, %v2082_v47  ;;  %v2307_v2 = vmax.f32 %v2079_v40, %v2243_v56 }
 0x3bf   :  { %v2377_v57 = vadd.f32 %v2376_v52, %v2375_v42  ;;  %v2305_v58 = vmax.f32 %v2071_v46, %v2241_v54  ;;  %v2382_v59 = vadd.f32 %v2381_v53, %v2304_v50  ;;  %v2242_v60 = vmul.f32 0.1, %v2074_v55 }
 0x3c0   :  { %v2308_v9 = vmax.f32 %v2082_v47, %v2244_v61 }
 0x3c1   :  { %v2378_v62 = vrot.slane %v2377_v57, 1  ;;  %v2383_v63 = vadd.f32 %v2382_v59, %v2305_v58  ;;  %v2306_v0 = vmax.f32 %v2074_v55, %v2242_v60  ;;  %v3194_v1 = vpop.f32.mrb[96].mxu1 }
 0x3c2   :  { %v2086_v3 = vpop.f32.mrb[97].mxu1  ;;  %v2095_v6 = vadd.f32 %v3194_v1, %v3794_v13 }
 0x3c3   :  { %v2379_v4 = vadd.f32 %v2378_v62, %v2377_v57  ;;  %v2384_v5 = vadd.f32 %v2383_v63, %v2306_v0  ;;  %v2087_v8 = vadd.f32 %v2086_v3, %v3794_v13  ;;  %v3195_v37 = vpop.f32.mrb[98].mxu1 }
 0x3c4   :  { %v2098_v10 = vadd.f32 %v3195_v37, %v3794_v13  ;;  %v2089_v11 = vpop.f32.mrb[99].mxu1  ;;  %v2247_v19 = vmul.f32 0.1, %v2095_v6 }
 0x3c5   :  { %v2447_v12 = vpack.c.bf16 %v2379_v4, %v2379_v4  ;;  %v2385_v14 = vadd.f32 %v2384_v5, %v2307_v2  ;;  %v2245_v15 = vmul.f32 0.1, %v2087_v8  ;;  %v2090_v16 = vadd.f32 %v2089_v11, %v3794_v13 }
 0x3c6   :  { %v2248_v7 = vmul.f32 0.1, %v2098_v10  ;;  %v2311_v28 = vmax.f32 %v2095_v6, %v2247_v19 }
 0x3c7   :  { %v2487_v17 = vunpack.c.l.b16 %v2447_v12  ;;  %v2386_v18 = vadd.f32 %v2385_v14, %v2308_v9  ;;  %v2246_v20 = vmul.f32 0.1, %v2090_v16  ;;  %v2309_v23 = vmax.f32 %v2087_v8, %v2245_v15 }
 0x3c8   :  { %v2312_v32 = vmax.f32 %v2098_v10, %v2248_v7 }
 0x3c9   :  { %v2496_v21 = vsel %vm2495_vm3, %v2487_v17, %v2494_v35  ;;  %v2387_v22 = vrot.slane %v2386_v18, 4  ;;  %v2310_v25 = vmax.f32 %v2090_v16, %v2246_v20  ;;  %v3198_v45 = vpop.f32.mrb[100].mxu1 }
 0x3ca   :  { %v2111_v24 = vadd.f32 %v3198_v45, %v3794_v13  ;;  %v2102_v26 = vpop.f32.mrb[101].mxu1 }
 0x3cb   :  { %v2388_v27 = vadd.f32 %v2387_v22, %v2386_v18  ;;  %v2393_v29 = vadd.f32 %v2310_v25, %v2309_v23  ;;  %v2103_v30 = vadd.f32 %v2102_v26, %v3794_v13  ;;  %v3199_v31 = vpop.f32.mrb[102].mxu1 }
 0x3cc   :  { %v2114_v33 = vadd.f32 %v3199_v31, %v3794_v13  ;;  %v2105_v34 = vpop.f32.mrb[103].mxu1  ;;  %v2251_v39 = vmul.f32 0.1, %v2111_v24 }
 0x3cd   :  { %v2389_v36 = vrot.slane %v2388_v27, 2  ;;  %v2394_v48 = vadd.f32 %v2393_v29, %v2311_v28  ;;  %v2249_v35 = vmul.f32 0.1, %v2103_v30  ;;  %v2106_v38 = vadd.f32 %v2105_v34, %v3794_v13 }
 0x3ce   :  { %v2252_v44 = vmul.f32 0.1, %v2114_v33  ;;  %v2315_v51 = vmax.f32 %v2111_v24, %v2251_v39 }
 0x3cf   :  { %v2390_v40 = vadd.f32 %v2389_v36, %v2388_v27  ;;  %v2313_v41 = vmax.f32 %v2103_v30, %v2249_v35  ;;  %v2395_v42 = vadd.f32 %v2394_v48, %v2312_v32  ;;  %v2250_v43 = vmul.f32 0.1, %v2106_v38 }
 0x3d0   :  { %v2316_v58 = vmax.f32 %v2114_v33, %v2252_v44 }
 0x3d1   :  { %v2391_v46 = vrot.slane %v2390_v40, 1  ;;  %v2396_v49 = vadd.f32 %v2395_v42, %v2313_v41  ;;  %v2314_v50 = vmax.f32 %v2106_v38, %v2250_v43  ;;  %v3202_v47 = vpop.f32.mrb[104].mxu1 }
 0x3d2   :  { %v2118_v52 = vpop.f32.mrb[105].mxu1  ;;  %v2127_v55 = vadd.f32 %v3202_v47, %v3794_v13 }
 0x3d3   :  { %v2392_v53 = vadd.f32 %v2391_v46, %v2390_v40  ;;  %v2397_v54 = vadd.f32 %v2396_v49, %v2314_v50  ;;  %v2119_v56 = vadd.f32 %v2118_v52, %v3794_v13  ;;  %v3203_v57 = vpop.f32.mrb[106].mxu1 }
 0x3d4   :  { %v2130_v59 = vadd.f32 %v3203_v57, %v3794_v13  ;;  %v2121_v60 = vpop.f32.mrb[107].mxu1  ;;  %v2255_v3 = vmul.f32 0.1, %v2127_v55 }
 0x3d5   :  { %v2448_v61 = vpack.c.bf16 %v2392_v53, %v2392_v53  ;;  %v2398_v62 = vadd.f32 %v2397_v54, %v2315_v51  ;;  %v2253_v63 = vmul.f32 0.1, %v2119_v56  ;;  %v2122_v0 = vadd.f32 %v2121_v60, %v3794_v13 }
 0x3d6   :  { %v2256_v5 = vmul.f32 0.1, %v2130_v59  ;;  %v2319_v15 = vmax.f32 %v2127_v55, %v2255_v3 }
 0x3d7   :  { %v2488_v1 = vunpack.c.l.b16 %v2448_v61  ;;  %v2399_v2 = vadd.f32 %v2398_v62, %v2316_v58  ;;  %v2254_v4 = vmul.f32 0.1, %v2122_v0  ;;  %v2317_v37 = vmax.f32 %v2119_v56, %v2253_v63 }
 0x3d8   :  { %v2320_v19 = vmax.f32 %v2130_v59, %v2256_v5 }
 0x3d9   :  { %v2498_v6 = vsel %vm2497_vm4, %v2488_v1, %v2496_v21  ;;  %v2400_v8 = vrot.slane %v2399_v2, 4  ;;  %v2318_v9 = vmax.f32 %v2122_v0, %v2254_v4  ;;  %v3206_v10 = vpop.f32.mrb[108].mxu1 }
 0x3da   :  { %v2143_v11 = vadd.f32 %v3206_v10, %v3794_v13  ;;  %v2134_v12 = vpop.f32.mrb[109].mxu1 }
 0x3db   :  { %v2401_v14 = vadd.f32 %v2400_v8, %v2399_v2  ;;  %v2406_v16 = vadd.f32 %v2318_v9, %v2317_v37  ;;  %v2135_v17 = vadd.f32 %v2134_v12, %v3794_v13  ;;  %v3207_v18 = vpop.f32.mrb[110].mxu1 }
 0x3dc   :  { %v2146_v20 = vadd.f32 %v3207_v18, %v3794_v13  ;;  %v2137_v7 = vpop.f32.mrb[111].mxu1  ;;  %v2259_v45 = vmul.f32 0.1, %v2143_v11 }
 0x3dd   :  { %v2402_v22 = vrot.slane %v2401_v14, 2  ;;  %v2407_v23 = vadd.f32 %v2406_v16, %v2319_v15  ;;  %v2257_v21 = vmul.f32 0.1, %v2135_v17  ;;  %v2138_v25 = vadd.f32 %v2137_v7, %v3794_v13 }
 0x3de   :  { %v2260_v29 = vmul.f32 0.1, %v2146_v20  ;;  %v2323_v34 = vmax.f32 %v2143_v11, %v2259_v45 }
 0x3df   :  { %v2403_v24 = vadd.f32 %v2402_v22, %v2401_v14  ;;  %v2321_v26 = vmax.f32 %v2135_v17, %v2257_v21  ;;  %v2408_v27 = vadd.f32 %v2407_v23, %v2320_v19  ;;  %v2258_v28 = vmul.f32 0.1, %v2138_v25 }
 0x3e0   :  { %v2324_v41 = vmax.f32 %v2146_v20, %v2260_v29 }
 0x3e1   :  { %v2404_v30 = vrot.slane %v2403_v24, 1  ;;  %v2409_v31 = vadd.f32 %v2408_v27, %v2321_v26  ;;  %v2322_v32 = vmax.f32 %v2138_v25, %v2258_v28  ;;  %v3210_v33 = vpop.f32.mrb[112].mxu1 }
 0x3e2   :  { %v2150_v36 = vpop.f32.mrb[113].mxu1  ;;  %v2159_v38 = vadd.f32 %v3210_v33, %v3794_v13 }
 0x3e3   :  { %v2405_v48 = vadd.f32 %v2404_v30, %v2403_v24  ;;  %v2410_v35 = vadd.f32 %v2409_v31, %v2322_v32  ;;  %v2151_v39 = vadd.f32 %v2150_v36, %v3794_v13  ;;  %v3211_v40 = vpop.f32.mrb[114].mxu1 }
 0x3e4   :  { %v2162_v42 = vadd.f32 %v3211_v40, %v3794_v13  ;;  %v2153_v43 = vpop.f32.mrb[115].mxu1  ;;  %v2263_v52 = vmul.f32 0.1, %v2159_v38 }
 0x3e5   :  { %v2449_v44 = vpack.c.bf16 %v2405_v48, %v2405_v48  ;;  %v2411_v46 = vadd.f32 %v2410_v35, %v2323_v34  ;;  %v2261_v49 = vmul.f32 0.1, %v2151_v39  ;;  %v2154_v50 = vadd.f32 %v2153_v43, %v3794_v13 }
 0x3e6   :  { %v2264_v54 = vmul.f32 0.1, %v2162_v42  ;;  %v2327_v63 = vmax.f32 %v2159_v38, %v2263_v52 }
 0x3e7   :  { %v2489_v47 = vunpack.c.l.b16 %v2449_v44  ;;  %v2412_v51 = vadd.f32 %v2411_v46, %v2324_v41  ;;  %v2262_v53 = vmul.f32 0.1, %v2154_v50  ;;  %v2325_v56 = vmax.f32 %v2151_v39, %v2261_v49 }
 0x3e8   :  { %v2328_v3 = vmax.f32 %v2162_v42, %v2264_v54 }
 0x3e9   :  { %v2413_v55 = vrot.slane %v2412_v51, 4  ;;  %v2326_v57 = vmax.f32 %v2154_v50, %v2262_v53  ;;  %v3214_v58 = vpop.f32.mrb[116].mxu1  ;;  %v2500_v59 = vsel %vm2499_vm5, %v2489_v47, %v2498_v6 }
 0x3ea   :  { %v2175_v60 = vadd.f32 %v3214_v58, %v3794_v13  ;;  %v2166_v61 = vpop.f32.mrb[117].mxu1 }
 0x3eb   :  { %v2414_v62 = vadd.f32 %v2413_v55, %v2412_v51  ;;  %v2419_v0 = vadd.f32 %v2326_v57, %v2325_v56  ;;  %v2167_v1 = vadd.f32 %v2166_v61, %v3794_v13  ;;  %v3215_v2 = vpop.f32.mrb[118].mxu1 }
 0x3ec   :  { %v2178_v4 = vadd.f32 %v3215_v2, %v3794_v13  ;;  %v2169_v5 = vpop.f32.mrb[119].mxu1  ;;  %v2267_v11 = vmul.f32 0.1, %v2175_v60 }
 0x3ed   :  { %v2415_v8 = vrot.slane %v2414_v62, 2  ;;  %v2420_v37 = vadd.f32 %v2419_v0, %v2327_v63  ;;  %v2265_v9 = vmul.f32 0.1, %v2167_v1  ;;  %v2170_v10 = vadd.f32 %v2169_v5, %v3794_v13 }
 0x3ee   :  { %v2268_v16 = vmul.f32 0.1, %v2178_v4  ;;  %v2331_v7 = vmax.f32 %v2175_v60, %v2267_v11 }
 0x3ef   :  { %v2416_v6 = vadd.f32 %v2415_v8, %v2414_v62  ;;  %v2329_v12 = vmax.f32 %v2167_v1, %v2265_v9  ;;  %v2421_v14 = vadd.f32 %v2420_v37, %v2328_v3  ;;  %v2266_v15 = vmul.f32 0.1, %v2170_v10 }
 0x3f0   :  { %v2332_v26 = vmax.f32 %v2178_v4, %v2268_v16 }
 0x3f1   :  { %v2417_v17 = vrot.slane %v2416_v6, 1  ;;  %v2422_v18 = vadd.f32 %v2421_v14, %v2329_v12  ;;  %v2330_v19 = vmax.f32 %v2170_v10, %v2266_v15  ;;  %v3218_v20 = vpop.f32.mrb[120].mxu1 }
 0x3f2   :  { %v2182_v22 = vpop.f32.mrb[121].mxu1  ;;  %v2191_v25 = vadd.f32 %v3218_v20, %v3794_v13 }
 0x3f3   :  { %v2418_v23 = vadd.f32 %v2417_v17, %v2416_v6  ;;  %v2423_v21 = vadd.f32 %v2422_v18, %v2330_v19  ;;  %v2183_v45 = vadd.f32 %v2182_v22, %v3794_v13  ;;  %v3219_v24 = vpop.f32.mrb[122].mxu1 }
 0x3f4   :  { %v2194_v27 = vadd.f32 %v3219_v24, %v3794_v13  ;;  %v2185_v28 = vpop.f32.mrb[123].mxu1  ;;  %v2271_v36 = vmul.f32 0.1, %v2191_v25 }
 0x3f5   :  { %v2450_v29 = vpack.c.bf16 %v2418_v23, %v2418_v23  ;;  %v2424_v30 = vadd.f32 %v2423_v21, %v2331_v7  ;;  %v2269_v31 = vmul.f32 0.1, %v2183_v45  ;;  %v2186_v32 = vadd.f32 %v2185_v28, %v3794_v13  ;;  %v2741_v23 = vld [vmem:[%s3882_s4] ss:$0 sm:$0xff] }
 0x3f6   :  { %v2272_v35 = vmul.f32 0.1, %v2194_v27  ;;  %v2335_v49 = vmax.f32 %v2191_v25, %v2271_v36 }
 0x3f7   :  { %v2490_v33 = vunpack.c.l.b16 %v2450_v29  ;;  %v2425_v34 = vadd.f32 %v2424_v30, %v2332_v26  ;;  %v2270_v48 = vmul.f32 0.1, %v2186_v32  ;;  %v2333_v39 = vmax.f32 %v2183_v45, %v2269_v31 }
 0x3f8   :  { %v2336_v52 = vmax.f32 %v2194_v27, %v2272_v35 }
 0x3f9   :  { %v2426_v38 = vrot.slane %v2425_v34, 4  ;;  %v2334_v40 = vmax.f32 %v2186_v32, %v2270_v48  ;;  %v3222_v41 = vpop.f32.mrb[124].mxu1  ;;  %v2502_v42 = vsel %vm2501_vm6, %v2490_v33, %v2500_v59 }
 0x3fa   :  { %v2207_v43 = vadd.f32 %v3222_v41, %v3794_v13  ;;  %v2198_v44 = vpop.f32.mrb[125].mxu1 }
 0x3fb   :  { %v2427_v46 = vadd.f32 %v2426_v38, %v2425_v34  ;;  %v2432_v50 = vadd.f32 %v2334_v40, %v2333_v39  ;;  %v2199_v47 = vadd.f32 %v2198_v44, %v3794_v13  ;;  %v3223_v51 = vpop.f32.mrb[126].mxu1 }
 0x3fc   :  { %v2210_v53 = vadd.f32 %v3223_v51, %v3794_v13  ;;  %v2201_v54 = vpop.f32.mrb[127].mxu1  ;;  %v2275_v60 = vmul.f32 0.1, %v2207_v43 }
 0x3fd   :  { %v2428_v55 = vrot.slane %v2427_v46, 2  ;;  %v2433_v56 = vadd.f32 %v2432_v50, %v2335_v49  ;;  %v2273_v57 = vmul.f32 0.1, %v2199_v47  ;;  %v2202_v58 = vadd.f32 %v2201_v54, %v3794_v13 }
 0x3fe   :  { %v2276_v2 = vmul.f32 0.1, %v2210_v53  ;;  %v2339_v5 = vmax.f32 %v2207_v43, %v2275_v60 }
 0x3ff   :  { %v2429_v59 = vadd.f32 %v2428_v55, %v2427_v46  ;;  %v2337_v61 = vmax.f32 %v2199_v47, %v2273_v57  ;;  %v2434_v62 = vadd.f32 %v2433_v56, %v2336_v52  ;;  %v2274_v63 = vmul.f32 0.1, %v2202_v58 }
 0x400   :  { %v2340_v9 = vmax.f32 %v2210_v53, %v2276_v2 }
 0x401   :  { %v2430_v0 = vrot.slane %v2429_v59, 1  ;;  %v2435_v1 = vadd.f32 %v2434_v62, %v2337_v61  ;;  %v2338_v3 = vmax.f32 %v2202_v58, %v2274_v63 }
 0x403   :  { %v2431_v4 = vadd.f32 %v2430_v0, %v2429_v59  ;;  %v2436_v8 = vadd.f32 %v2435_v1, %v2338_v3 }
 0x405   :  { %v2451_v37 = vpack.c.bf16 %v2431_v4, %v2431_v4  ;;  %v2437_v10 = vadd.f32 %v2436_v8, %v2339_v5 }
 0x407   :  { %v2491_v11 = vunpack.c.l.b16 %v2451_v37  ;;  %v2438_v6 = vadd.f32 %v2437_v10, %v2340_v9 }
 0x409   :  { %v2439_v12 = vrot.slane %v2438_v6, 4  ;;  %v2504_v13 = vsel %vm2503_vm7, %v2491_v11, %v2502_v42 }
 0x40b   :  { %v2440_v14 = vadd.f32 %v2439_v12, %v2438_v6 }
 0x40d   :  { %v2441_v15 = vrot.slane %v2440_v14, 2 }
 0x40f   :  { %v2442_v16 = vadd.f32 %v2441_v15, %v2440_v14 }
 0x411   :  { %v2443_v17 = vrot.slane %v2442_v16, 1 }
 0x413   :  { %v2444_v18 = vadd.f32 %v2443_v17, %v2442_v16 }
 0x415   :  { %v2452_v19 = vpack.c.bf16 %v2444_v18, %v2444_v18 }
 0x417   :  { %v2492_v20 = vunpack.c.l.b16 %v2452_v19 }
 0x419   :  { %v2506_v7 = vsel %vm2505_vm8, %v2492_v20, %v2504_v13 }
 0x41a   :  { %v2507_v22 = vpack.c.b16 %v2506_v7, %v2506_v7 }
 0x41c   :  { %3241 = vmatmul.mubr.bf16.vlgmr.msra.gmra.mrb[128].mxu0 %v2507_v22 }
 0x4ef   :  { %v2591_v21 = vpop.f32.mrb[128].mxu0 }
 0x4f0   :  { %v2592_v25 = vadd.f32 %v2741_v23, %v2591_v21  ;;  %v3242_v45 = vpop.f32.mrb[129].mxu0 }
 0x4f1   :  { %v2594_v24 = vpop.f32.mrb[130].mxu0 }
 0x4f2   :  { %2597 = vst [vmem:[%s3883_s5] sm:$0xff] %v2592_v25  ;;  %v3243_v26 = vpop.f32.mrb[131].mxu0 }

</bundles_post_ra>
